<compile_context>
chip_gen: v7x
topology: tpu7x:2x2x1
jax: 0.10.0
libtpu: 0.0.40
codegen_flags: <defaults>
</compile_context>

<pallas_src>
import jax
import jax.numpy as jnp
from jax.experimental import pallas as pl
from jax.experimental.pallas import tpu as pltpu

QPG = 8          # channels summed per group (256 / 32 in the original module)
KI = 3           # stage-A 1-d kernel size (along W)
KH = KW = 3      # stage-B 2-d kernel size


def _fused_kernel(x_ref, b_ref, w1_ref, o_ref):
    # x_ref : (Nb, H, W+2, C)   input block, zero-padded by 1 along W
    # b_ref : (C, KI*GM)        stage-A weights (block-diag over groups, taps
    #                           folded into the output dim)
    # w1_ref: (KH, KW*GM, OC)   stage-B weights (kw taps folded into K)
    # o_ref : (Nb, H, W, OC)    output block (NHWC)
    Nb, H, Wp2, C = x_ref.shape
    W = Wp2 - 2
    KIGM = b_ref.shape[1]
    GM = KIGM // KI
    OC = w1_ref.shape[2]
    f32 = jnp.float32
    cdt = x_ref.dtype                       # compute dtype (f32 or bf16)

    # ---- Stage A: one big MXU matmul over the whole block ----
    x2d = x_ref[...].reshape(Nb * H * Wp2, C)
    pa = jnp.dot(x2d, b_ref[...], preferred_element_type=f32)
    pa = pa.reshape(Nb, H, Wp2, KIGM)
    # combine the 3 taps: shift along W, pick that tap's output lane slice
    t = (pa[:, :, 0:W,               0:GM]
         + pa[:, :, 1:W + 1,        GM:2 * GM]
         + pa[:, :, 2:W + 2,    2 * GM:3 * GM]).astype(cdt)     # (Nb, H, W, GM)

    # zero-pad H and W by 1 (stage-B "same" conv padding), as values
    zw = jnp.zeros((Nb, H, 1, GM), cdt)
    t = jnp.concatenate([zw, t, zw], axis=2)                    # (Nb, H, W+2, GM)
    zh = jnp.zeros((Nb, 1, Wp2, GM), cdt)
    tp = jnp.concatenate([zh, t, zh], axis=1)                   # (Nb, H+2, W+2, GM)

    # ---- Stage B: fold the kw taps into the contraction dim (K = KW*GM) ----
    tcat = jnp.concatenate([tp[:, :, kw:kw + W, :] for kw in range(KW)],
                           axis=-1)                             # (Nb, H+2, W, KW*GM)
    acc = None
    for kh in range(KH):
        ts = tcat[:, kh:kh + H, :, :].reshape(Nb * H * W, KW * GM)
        d = jnp.dot(ts, w1_ref[kh], preferred_element_type=f32)
        acc = d if acc is None else acc + d

    # single lane-dense block store
    o_ref[...] = acc.reshape(Nb, H, W, OC).astype(o_ref.dtype)


def kernel_manual_4_forward(x, w1, w2, *, compute_dtype=jnp.float32, block_n=8):
    """x: (N, C, H, W); w1: (OC, G, 3, 3, M); w2: (C, 3, M); C == G*8."""
    N, C, H, W = x.shape
    OC, G, kh_, kw_, M = w1.shape
    assert (kh_, kw_) == (KH, KW)
    assert C == G * QPG and w2.shape == (C, KI, M)
    GM = G * M

    # images processed per grid step (largest divisor of N that is <= block_n)
    Nb = max(d for d in range(1, min(block_n, N) + 1) if N % d == 0)

    # ---- glue (plain JAX): layout changes + weight re-packing ----
    x_nhwc = jnp.transpose(x, (0, 2, 3, 1))
    x_pad = jnp.pad(x_nhwc, ((0, 0), (0, 0), (1, 1), (0, 0))).astype(compute_dtype)

    # stage-A weight: Bpk[c, i*GM + g*M + m] = w2[c, i, m] * [c // 8 == g]
    grp = (jnp.arange(C)[:, None] // QPG == jnp.arange(G)[None, :]).astype(w2.dtype)
    b_pk = jnp.einsum('cim,cg->cigm', w2, grp).reshape(C, KI * GM).astype(compute_dtype)

    # stage-B weight: W1c[kh, kw*GM + g*M + m, oc] = w1[oc, g, kh, kw, m]
    w1c = jnp.transpose(w1, (2, 3, 1, 4, 0)).reshape(KH, KW * GM, OC).astype(compute_dtype)

    itemsize = jnp.dtype(compute_dtype).itemsize
    cost = pl.CostEstimate(
        flops=(2 * N * H * (W + 2) * C * (KI * GM)
               + 2 * N * H * W * (KW * GM) * OC * KH),
        transcendentals=0,
        bytes_accessed=((x_pad.size + b_pk.size + w1c.size) * itemsize
                        + N * H * W * OC * jnp.dtype(x.dtype).itemsize),
    )

    out_nhwc = pl.pallas_call(
        _fused_kernel,
        out_shape=jax.ShapeDtypeStruct((N, H, W, OC), x.dtype),
        grid_spec=pltpu.PrefetchScalarGridSpec(
            num_scalar_prefetch=0,
            grid=(N // Nb,),
            in_specs=[
                pl.BlockSpec((Nb, H, W + 2, C), lambda n: (n, 0, 0, 0)),
                pl.BlockSpec((C, KI * GM), lambda n: (0, 0)),
                pl.BlockSpec((KH, KW * GM, OC), lambda n: (0, 0, 0)),
            ],
            out_specs=pl.BlockSpec((Nb, H, W, OC), lambda n: (n, 0, 0, 0)),
        ),
        compiler_params=pltpu.CompilerParams(
            dimension_semantics=("parallel",),
            vmem_limit_bytes=48 * 1024 * 1024,
        ),
        cost_estimate=cost,
    )(x_pad, b_pk, w1c)

    return jnp.transpose(out_nhwc, (0, 3, 1, 2))            # back to NCHW


def _reference(x, w1, w2):
    """Pure-JAX reference of the PyTorch forward."""
    N, C, H, W = x.shape
    OC, G, _, _, M = w1.shape
    xp = jnp.pad(x, ((0, 0), (0, 0), (0, 0), (1, 1)))
    xs = jnp.stack([xp[..., i:i + W] for i in range(KI)], axis=-1)   # (N,C,H,W,KI)
    t4 = jnp.einsum('nchwi,cim->nchwm', xs, w2)
    t5 = t4.reshape(N, G, QPG, H, W, M).sum(axis=2)                  # (N,G,H,W,M)
    t5p = jnp.pad(t5, ((0, 0), (0, 0), (1, 1), (1, 1), (0, 0)))
    patches = jnp.stack(
        [jnp.stack([t5p[:, :, kh:kh + H, kw:kw + W, :] for kw in range(KW)], axis=2)
         for kh in range(KH)], axis=2)                               # (N,G,KH,KW,H,W,M)
    return jnp.einsum('ngjkhwm,ogjkm->nohw', patches, w1)


if __name__ == "__main__":
    # Small shapes consistent with the module structure
    # (original module: N=1024, C=256, H=W=14, G=32, M=4, OC=256).
    N, C, H, W = 4, 16, 6, 6
    G, M, OC = C // QPG, 4, 8

    key = jax.random.PRNGKey(0)
    kx, k1, k2 = jax.random.split(key, 3)
    x = jax.random.normal(kx, (N, C, H, W), dtype=jnp.float32)
    w1 = jax.random.normal(k1, (OC, G, KH, KW, M), dtype=jnp.float32)
    w2 = jax.random.normal(k2, (C, KI, M), dtype=jnp.float32)

    fwd = jax.jit(kernel_manual_4_forward,
                  static_argnames=("compute_dtype", "block_n"))

    # f32 path (matches the PyTorch module's numerics)
    y = jax.block_until_ready(fwd(x, w1, w2))
    y_ref = _reference(x, w1, w2)
    assert y.shape == (N, OC, H, W)
    assert jnp.allclose(y, y_ref, atol=1e-2, rtol=1e-2)

    # bf16-operand MXU path (v6e/v7x optimization); f32 accumulation retained.
    y_bf16 = jax.block_until_ready(fwd(x, w1, w2, compute_dtype=jnp.bfloat16))
    err = float(jnp.max(jnp.abs(y_bf16 - y_ref)))
    scale = float(jnp.max(jnp.abs(y_ref)))
    assert err <= 0.1 * scale

    print("KERNEL_OK")
</pallas_src>

<mosaic_0001>
module attributes {stable_mosaic.version = 11 : i64} {
  func.func @_fused_kernel(%arg0: i32, %arg1: memref<4x6x8x16xf32, #tpu.memory_space<vmem>>, %arg2: memref<16x24xf32, #tpu.memory_space<vmem>>, %arg3: memref<3x24x8xf32, #tpu.memory_space<vmem>>, %arg4: memref<4x6x6x8xf32, #tpu.memory_space<vmem>>) attributes {dimension_semantics = [#tpu.dimension_semantics<parallel>], iteration_bounds = array<i64: 1>, scalar_prefetch = 0 : i64, scratch_operands = 0 : i64, tpu.core_type = #tpu.core_type<tc>, window_params = [{transform_indices = @transform_0, window_bounds = array<i64: 4, 6, 8, 16>}, {pipeline_mode = #tpu.pipeline_mode<synchronous>, transform_indices = @transform_1, window_bounds = array<i64: 16, 24>}, {pipeline_mode = #tpu.pipeline_mode<synchronous>, transform_indices = @transform_2, window_bounds = array<i64: 3, 24, 8>}, {transform_indices = @transform_3, window_bounds = array<i64: 4, 6, 6, 8>}]} {
    %c0 = arith.constant 0 : index
    %c0_0 = arith.constant 0 : index
    %c0_1 = arith.constant 0 : index
    %c0_2 = arith.constant 0 : index
    %0 = vector.load %arg1[%c0, %c0_0, %c0_1, %c0_2] : memref<4x6x8x16xf32, #tpu.memory_space<vmem>>, vector<4x6x8x16xf32>
    %1 = vector.shape_cast %0 : vector<4x6x8x16xf32> to vector<192x16xf32>
    %c0_3 = arith.constant 0 : index
    %c0_4 = arith.constant 0 : index
    %2 = vector.load %arg2[%c0_3, %c0_4] : memref<16x24xf32, #tpu.memory_space<vmem>>, vector<16x24xf32>
    %cst = arith.constant dense<0.000000e+00> : vector<192x24xf32>
    %3 = tpu.matmul %1, %2, %cst {dimension_numbers = #tpu.dot_dimension_numbers<[1], [0], [0], [1], [0, 0, 1, 1], [], []>} : vector<192x16xf32>, vector<16x24xf32>, vector<192x24xf32> -> vector<192x24xf32>
    %4 = vector.shape_cast %3 : vector<192x24xf32> to vector<4x6x8x24xf32>
    %5 = vector.extract_strided_slice %4 {offsets = [0, 0, 0, 0], sizes = [4, 6, 6, 8], strides = [1, 1, 1, 1]} : vector<4x6x8x24xf32> to vector<4x6x6x8xf32>
    %6 = vector.extract_strided_slice %4 {offsets = [0, 0, 1, 8], sizes = [4, 6, 6, 8], strides = [1, 1, 1, 1]} : vector<4x6x8x24xf32> to vector<4x6x6x8xf32>
    %7 = arith.addf %5, %6 : vector<4x6x6x8xf32>
    %8 = vector.extract_strided_slice %4 {offsets = [0, 0, 2, 16], sizes = [4, 6, 6, 8], strides = [1, 1, 1, 1]} : vector<4x6x8x24xf32> to vector<4x6x6x8xf32>
    %9 = arith.addf %7, %8 : vector<4x6x6x8xf32>
    %cst_5 = arith.constant 0.000000e+00 : f32
    %10 = vector.broadcast %cst_5 : f32 to vector<4x6x1x8xf32>
    %11 = tpu.concatenate %10, %9, %10 in 2 : vector<4x6x1x8xf32>, vector<4x6x6x8xf32>, vector<4x6x1x8xf32> -> vector<4x6x8x8xf32>
    %cst_6 = arith.constant 0.000000e+00 : f32
    %12 = vector.broadcast %cst_6 : f32 to vector<4x1x8x8xf32>
    %13 = tpu.concatenate %12, %11, %12 in 1 : vector<4x1x8x8xf32>, vector<4x6x8x8xf32>, vector<4x1x8x8xf32> -> vector<4x8x8x8xf32>
    %14 = vector.extract_strided_slice %13 {offsets = [0, 0, 0, 0], sizes = [4, 8, 6, 8], strides = [1, 1, 1, 1]} : vector<4x8x8x8xf32> to vector<4x8x6x8xf32>
    %15 = vector.extract_strided_slice %13 {offsets = [0, 0, 1, 0], sizes = [4, 8, 6, 8], strides = [1, 1, 1, 1]} : vector<4x8x8x8xf32> to vector<4x8x6x8xf32>
    %16 = vector.extract_strided_slice %13 {offsets = [0, 0, 2, 0], sizes = [4, 8, 6, 8], strides = [1, 1, 1, 1]} : vector<4x8x8x8xf32> to vector<4x8x6x8xf32>
    %17 = tpu.concatenate %14, %15, %16 in 3 : vector<4x8x6x8xf32>, vector<4x8x6x8xf32>, vector<4x8x6x8xf32> -> vector<4x8x6x24xf32>
    %18 = vector.extract_strided_slice %17 {offsets = [0, 0, 0, 0], sizes = [4, 6, 6, 24], strides = [1, 1, 1, 1]} : vector<4x8x6x24xf32> to vector<4x6x6x24xf32>
    %19 = vector.shape_cast %18 : vector<4x6x6x24xf32> to vector<144x24xf32>
    %c0_7 = arith.constant 0 : index
    %c0_8 = arith.constant 0 : index
    %c0_9 = arith.constant 0 : index
    %20 = vector.load %arg3[%c0_7, %c0_8, %c0_9] : memref<3x24x8xf32, #tpu.memory_space<vmem>>, vector<1x24x8xf32>
    %21 = vector.shape_cast %20 : vector<1x24x8xf32> to vector<24x8xf32>
    %cst_10 = arith.constant dense<0.000000e+00> : vector<144x8xf32>
    %22 = tpu.matmul %19, %21, %cst_10 {dimension_numbers = #tpu.dot_dimension_numbers<[1], [0], [0], [1], [0, 0, 1, 1], [], []>} : vector<144x24xf32>, vector<24x8xf32>, vector<144x8xf32> -> vector<144x8xf32>
    %23 = vector.extract_strided_slice %17 {offsets = [0, 1, 0, 0], sizes = [4, 6, 6, 24], strides = [1, 1, 1, 1]} : vector<4x8x6x24xf32> to vector<4x6x6x24xf32>
    %24 = vector.shape_cast %23 : vector<4x6x6x24xf32> to vector<144x24xf32>
    %c1 = arith.constant 1 : index
    %c0_11 = arith.constant 0 : index
    %c0_12 = arith.constant 0 : index
    %25 = vector.load %arg3[%c1, %c0_11, %c0_12] : memref<3x24x8xf32, #tpu.memory_space<vmem>>, vector<1x24x8xf32>
    %26 = vector.shape_cast %25 : vector<1x24x8xf32> to vector<24x8xf32>
    %cst_13 = arith.constant dense<0.000000e+00> : vector<144x8xf32>
    %27 = tpu.matmul %24, %26, %cst_13 {dimension_numbers = #tpu.dot_dimension_numbers<[1], [0], [0], [1], [0, 0, 1, 1], [], []>} : vector<144x24xf32>, vector<24x8xf32>, vector<144x8xf32> -> vector<144x8xf32>
    %28 = arith.addf %22, %27 : vector<144x8xf32>
    %29 = vector.extract_strided_slice %17 {offsets = [0, 2, 0, 0], sizes = [4, 6, 6, 24], strides = [1, 1, 1, 1]} : vector<4x8x6x24xf32> to vector<4x6x6x24xf32>
    %30 = vector.shape_cast %29 : vector<4x6x6x24xf32> to vector<144x24xf32>
    %c2 = arith.constant 2 : index
    %c0_14 = arith.constant 0 : index
    %c0_15 = arith.constant 0 : index
    %31 = vector.load %arg3[%c2, %c0_14, %c0_15] : memref<3x24x8xf32, #tpu.memory_space<vmem>>, vector<1x24x8xf32>
    %32 = vector.shape_cast %31 : vector<1x24x8xf32> to vector<24x8xf32>
    %cst_16 = arith.constant dense<0.000000e+00> : vector<144x8xf32>
    %33 = tpu.matmul %30, %32, %cst_16 {dimension_numbers = #tpu.dot_dimension_numbers<[1], [0], [0], [1], [0, 0, 1, 1], [], []>} : vector<144x24xf32>, vector<24x8xf32>, vector<144x8xf32> -> vector<144x8xf32>
    %34 = arith.addf %28, %33 : vector<144x8xf32>
    %35 = vector.shape_cast %34 : vector<144x8xf32> to vector<4x6x6x8xf32>
    %c0_17 = arith.constant 0 : index
    %c0_18 = arith.constant 0 : index
    %c0_19 = arith.constant 0 : index
    %c0_20 = arith.constant 0 : index
    %36 = vector.load %arg4[%c0_17, %c0_18, %c0_19, %c0_20] : memref<4x6x6x8xf32, #tpu.memory_space<vmem>>, vector<4x6x6x8xf32>
    tpu.vector_store %arg4[%c0_17, %c0_18, %c0_19, %c0_20], %35 {strides = array<i32>} : memref<4x6x6x8xf32, #tpu.memory_space<vmem>>, vector<4x6x6x8xf32>,
    return
  }
  func.func @transform_0(%arg0: i32) -> (i32, i32, i32, i32) {
    %c0_i32 = arith.constant 0 : i32
    %c0_i32_0 = arith.constant 0 : i32
    %c0_i32_1 = arith.constant 0 : i32
    %c0_i32_2 = arith.constant 0 : i32
    return %arg0, %c0_i32, %c0_i32_0, %c0_i32_1 : i32, i32, i32, i32
  }
  func.func @transform_1(%arg0: i32) -> (i32, i32) {
    %c0_i32 = arith.constant 0 : i32
    %c0_i32_0 = arith.constant 0 : i32
    %c0_i32_1 = arith.constant 0 : i32
    return %c0_i32, %c0_i32_0 : i32, i32
  }
  func.func @transform_2(%arg0: i32) -> (i32, i32, i32) {
    %c0_i32 = arith.constant 0 : i32
    %c0_i32_0 = arith.constant 0 : i32
    %c0_i32_1 = arith.constant 0 : i32
    %c0_i32_2 = arith.constant 0 : i32
    return %c0_i32, %c0_i32_0, %c0_i32_1 : i32, i32, i32
  }
  func.func @transform_3(%arg0: i32) -> (i32, i32, i32, i32) {
    %c0_i32 = arith.constant 0 : i32
    %c0_i32_0 = arith.constant 0 : i32
    %c0_i32_1 = arith.constant 0 : i32
    %c0_i32_2 = arith.constant 0 : i32
    return %arg0, %c0_i32, %c0_i32_0, %c0_i32_1 : i32, i32, i32, i32
  }
}

</mosaic_0001>

<bundles_post_ra>
// kernel: kernel_manual_4_forward.1
= control target key start
LH: loop header
LB: loop body
LE: loop exit
PB: predicated region body
PF: predicated region fallthrough
CT: control target
= control target key end

     0   :  { %vm40_vm0 = vcmask 130048   ;;  %s3802_s8 = smov 120   ;;  %s3803_s9 = smov 112   ;;  %vm634_vm1 = vcmask 1040384   ;;  %vm659_vm2 = vcmask 1046528   ;;  %vm909_vm3 = vcmask 64512   ;;  %s5137_s1 = inlined_call_operand.vmem [shape: f32[16,24], index: 1, kind: input, shape index: {}]   ;;  %s5138_s0 = inlined_call_operand.vmem [shape: f32[4,6,8,16], index: 0, kind: input, shape index: {}]   ;;  %s5139_s2 = inlined_call_operand.vmem [shape: f32[3,24,8], index: 2, kind: input, shape index: {}]   ;;  %s5140_s3 = inlined_call_operand.vmem [shape: f32[4,6,6,8], index: 3, kind: output, shape index: {}]  }
   0x1   :  { %v38_v0 = vld [vmem:[%s5137_s1] sm:$0xff]  ;;  %v39_v1 = vld [vmem:[%s5137_s1 + $0x8] sm:$0xff]  ;;  %v16_v5 = vld [vmem:[%s5138_s0 + $0x10] sm:$0xff]  ;;  %s3805_s10 = smov 8   ;;  %vm1698_vm4 = vcmask 195584   ;;  %vm3398_vm5 = vcmask 62464  }
   0x2   :  { %v14_v2 = vld [vmem:[%s5138_s0] sm:$0xff]  ;;  %v3739_v3 = vpack.c.bf16 %v39_v1, %v38_v0  ;;  %v15_v4 = vld [vmem:[%s5138_s0 + $0x8] sm:$0xff]  ;;  %v17_v6 = vld [vmem:[%s5138_s0 + $0x18] sm:$0xff] }
   0x3   :  { %3604 = vmatprep.mubr.msk.f32.mxu0 %vm40_vm0, %v14_v2  ;;  %v18_v7 = vld [vmem:[%s5138_s0 + $0x20] sm:$0xff]  ;;  %v19_v8 = vld [vmem:[%s5138_s0 + $0x28] sm:$0xff]  ;;  %v20_v9 = vld [vmem:[%s5138_s0 + $0x30] sm:$0xff] }
   0x4   :  { %3740 = vmatprep.subr.bf16.mxu0 %v3739_v3  ;;  %v21_v10 = vld [vmem:[%s5138_s0 + $0x38] sm:$0xff]  ;;  %v22_v11 = vld [vmem:[%s5138_s0 + $0x40] sm:$0xff]  ;;  %v23_v12 = vld [vmem:[%s5138_s0 + $0x48] sm:$0xff] }
   0x5   :  { %3742 = vmatpush3.bf16.msra.mxu0 %v3739_v3  ;;  %v24_v13 = vld [vmem:[%s5138_s0 + $0x50] sm:$0xff]  ;;  %v25_v14 = vld [vmem:[%s5138_s0 + $0x58] sm:$0xff]  ;;  %v26_v15 = vld [vmem:[%s5138_s0 + $0x60] sm:$0xff] }
   0x6   :  { %v27_v16 = vld [vmem:[%s5138_s0 + $0x68] sm:$0xff]  ;;  %v28_v17 = vld [vmem:[%s5138_s0 + $0x70] sm:$0xff]  ;;  %v29_v18 = vld [vmem:[%s5138_s0 + $0x78] sm:$0xff] }
   0x7   :  { %v30_v19 = vld [vmem:[%s5138_s0 + $0x80] sm:$0xff]  ;;  %v31_v20 = vld [vmem:[%s5138_s0 + $0x88] sm:$0xff]  ;;  %v32_v21 = vld [vmem:[%s5138_s0 + $0x90] sm:$0xff] }
   0x8   :  { %3605 = vmatmul.mubr.msk.f32.vlgmr.msra.gmra.mrb[0].mxu0 %vm40_vm0, %v15_v4  ;;  %v33_v22 = vld [vmem:[%s5138_s0 + $0x98] sm:$0xff]  ;;  %v34_v23 = vld [vmem:[%s5138_s0 + $0xa0] sm:$0xff]  ;;  %v35_v24 = vld [vmem:[%s5138_s0 + $0xa8] sm:$0xff] }
   0x9   :  { %3607 = vmatprep.mubr.msk.f32.mxu0 %vm40_vm0, %v16_v5  ;;  %v36_v25 = vld [vmem:[%s5138_s0 + $0xb0] sm:$0xff]  ;;  %v37_v26 = vld [vmem:[%s5138_s0 + $0xb8] sm:$0xff]  ;;  %s3804_s0 = smov 16  }
   0xc   :  { %3608 = vmatmul.mubr.msk.f32.gmra.mrb[2].mxu0 %vm40_vm0, %v17_v6 }
   0xd   :  { %3610 = vmatprep.mubr.msk.f32.mxu0 %vm40_vm0, %v18_v7 }
  0x10   :  { %3611 = vmatmul.mubr.msk.f32.gmra.mrb[4].mxu0 %vm40_vm0, %v19_v8 }
  0x11   :  { %3613 = vmatprep.mubr.msk.f32.mxu0 %vm40_vm0, %v20_v9 }
  0x14   :  { %3614 = vmatmul.mubr.msk.f32.gmra.mrb[6].mxu0 %vm40_vm0, %v21_v10 }
  0x15   :  { %3616 = vmatprep.mubr.msk.f32.mxu0 %vm40_vm0, %v22_v11 }
  0x18   :  { %3617 = vmatmul.mubr.msk.f32.gmra.mrb[8].mxu0 %vm40_vm0, %v23_v12 }
  0x19   :  { %3619 = vmatprep.mubr.msk.f32.mxu0 %vm40_vm0, %v24_v13 }
  0x1c   :  { %3620 = vmatmul.mubr.msk.f32.gmra.mrb[10].mxu0 %vm40_vm0, %v25_v14 }
  0x1d   :  { %3622 = vmatprep.mubr.msk.f32.mxu0 %vm40_vm0, %v26_v15 }
  0x20   :  { %3623 = vmatmul.mubr.msk.f32.gmra.mrb[12].mxu0 %vm40_vm0, %v27_v16 }
  0x21   :  { %3625 = vmatprep.mubr.msk.f32.mxu0 %vm40_vm0, %v28_v17 }
  0x24   :  { %3626 = vmatmul.mubr.msk.f32.gmra.mrb[14].mxu0 %vm40_vm0, %v29_v18 }
  0x25   :  { %3628 = vmatprep.mubr.msk.f32.mxu0 %vm40_vm0, %v30_v19 }
  0x28   :  { %3629 = vmatmul.mubr.msk.f32.gmra.mrb[16].mxu0 %vm40_vm0, %v31_v20 }
  0x29   :  { %3631 = vmatprep.mubr.msk.f32.mxu0 %vm40_vm0, %v32_v21 }
  0x2c   :  { %3632 = vmatmul.mubr.msk.f32.gmra.mrb[18].mxu0 %vm40_vm0, %v33_v22 }
  0x2d   :  { %3634 = vmatprep.mubr.msk.f32.mxu0 %vm40_vm0, %v34_v23 }
  0x30   :  { %3635 = vmatmul.mubr.msk.f32.gmra.mrb[20].mxu0 %vm40_vm0, %v35_v24 }
  0x31   :  { %3637 = vmatprep.mubr.msk.f32.mxu0 %vm40_vm0, %v36_v25 }
  0x34   :  { %3638 = vmatmul.mubr.msk.f32.gmra.mrb[22].mxu0 %vm40_vm0, %v37_v26 }
  0xdb   :  { %v3930_v27 = vpop.f32.mrb[0].mxu0 }
  0xdc   :  { %v3932_v28 = vpop.f32.mrb[1].mxu0  ;;  %v323_v29 = vrot.slane %v3930_v27, 1  ;;  %v443_v32 = vrot.slane %v3930_v27, 2 }
  0xdd   :  { %v442_v30 = vrot.slane %v3932_v28, 2  ;;  %v322_v36 = vrot.slane %v3932_v28, 1 }
  0xde   :  { %348 = vrot.lane.b32.xlu0 %v323_v29, %s3802_s8 }
  0xdf   :  { %466 = vrot.lane.b32.xlu1 %v442_v30, %s3803_s9  ;;  %v3938_v31 = vpop.f32.mrb[2].mxu0 }
  0xe0   :  { %v3941_v33 = vpop.f32.mrb[3].mxu0  ;;  %v325_v41 = vrot.slane %v3938_v31, 1  ;;  %v445_v44 = vrot.slane %v3938_v31, 2 }
  0xe1   :  { %v324_v34 = vrot.slane %v3941_v33, 1  ;;  %v444_v38 = vrot.slane %v3941_v33, 2 }
  0xe2   :  { %468 = vrot.lane.b32.xlu0 %v443_v32, %s3803_s9 }
  0xe3   :  { %350 = vrot.lane.b32.xlu1 %v324_v34, %s3802_s8  ;;  %v3946_v35 = vpop.f32.mrb[4].mxu0 }
  0xe4   :  { %v3949_v37 = vpop.f32.mrb[5].mxu0  ;;  %v327_v39 = vrot.slane %v3946_v35, 1  ;;  %v447_v46 = vrot.slane %v3946_v35, 2 }
  0xe5   :  { %v446_v48 = vrot.slane %v3949_v37, 2  ;;  %v326_v50 = vrot.slane %v3949_v37, 1 }
  0xe6   :  { %346 = vrot.lane.b32.xlu0 %v322_v36, %s3802_s8 }
  0xe7   :  { %470 = vrot.lane.b32.xlu1 %v444_v38, %s3803_s9  ;;  %v3955_v40 = vpop.f32.mrb[6].mxu0 }
  0xe8   :  { %v3958_v42 = vpop.f32.mrb[7].mxu0  ;;  %v329_v51 = vrot.slane %v3955_v40, 1  ;;  %v449_v52 = vrot.slane %v3955_v40, 2 }
  0xe9   :  { %v448_v56 = vrot.slane %v3958_v42, 2  ;;  %v328_v58 = vrot.slane %v3958_v42, 1 }
  0xea   :  { %352 = vrot.lane.b32.xlu0 %v325_v41, %s3802_s8 }
  0xeb   :  { %356 = vrot.lane.b32.xlu1 %v327_v39, %s3802_s8  ;;  %v3962_v43 = vpop.f32.mrb[8].mxu0 }
  0xec   :  { %v3965_v45 = vpop.f32.mrb[9].mxu0  ;;  %v451_v59 = vrot.slane %v3962_v43, 2  ;;  %v331_v60 = vrot.slane %v3962_v43, 1 }
  0xed   :  { %v330_v0 = vrot.slane %v3965_v45, 1  ;;  %v450_v2 = vrot.slane %v3965_v45, 2 }
  0xee   :  { %472 = vrot.lane.b32.xlu0 %v445_v44, %s3803_s9 }
  0xef   :  { %476 = vrot.lane.b32.xlu1 %v447_v46, %s3803_s9  ;;  %v3970_v47 = vpop.f32.mrb[10].mxu0 }
  0xf0   :  { %v3973_v49 = vpop.f32.mrb[11].mxu0  ;;  %v333_v3 = vrot.slane %v3970_v47, 1  ;;  %v453_v9 = vrot.slane %v3970_v47, 2 }
  0xf1   :  { %v452_v4 = vrot.slane %v3973_v49, 2  ;;  %v332_v11 = vrot.slane %v3973_v49, 1 }
  0xf2   :  { %474 = vrot.lane.b32.xlu0 %v446_v48, %s3803_s9 }
  0xf3   :  { %354 = vrot.lane.b32.xlu1 %v326_v50, %s3802_s8  ;;  %v3980_v53 = vpop.f32.mrb[12].mxu0 }
  0xf4   :  { %v3982_v54 = vpop.f32.mrb[13].mxu0  ;;  %v335_v7 = vrot.slane %v3980_v53, 1  ;;  %v455_v12 = vrot.slane %v3980_v53, 2 }
  0xf5   :  { %v454_v13 = vrot.slane %v3982_v54, 2  ;;  %v334_v14 = vrot.slane %v3982_v54, 1 }
  0xf6   :  { %360 = vrot.lane.b32.xlu0 %v329_v51, %s3802_s8 }
  0xf7   :  { %480 = vrot.lane.b32.xlu1 %v449_v52, %s3803_s9  ;;  %v3986_v55 = vpop.f32.mrb[14].mxu0 }
  0xf8   :  { %v3989_v57 = vpop.f32.mrb[15].mxu0  ;;  %v337_v15 = vrot.slane %v3986_v55, 1  ;;  %v457_v16 = vrot.slane %v3986_v55, 2 }
  0xf9   :  { %v456_v17 = vrot.slane %v3989_v57, 2  ;;  %v336_v18 = vrot.slane %v3989_v57, 1 }
  0xfa   :  { %478 = vrot.lane.b32.xlu0 %v448_v56, %s3803_s9 }
  0xfb   :  { %358 = vrot.lane.b32.xlu1 %v328_v58, %s3802_s8  ;;  %v3996_v61 = vpop.f32.mrb[16].mxu0 }
  0xfc   :  { %v3998_v62 = vpop.f32.mrb[17].mxu0  ;;  %v459_v19 = vrot.slane %v3996_v61, 2  ;;  %v339_v20 = vrot.slane %v3996_v61, 1 }
  0xfd   :  { %v338_v21 = vrot.slane %v3998_v62, 1  ;;  %v458_v22 = vrot.slane %v3998_v62, 2 }
  0xfe   :  { %484 = vrot.lane.b32.xlu0 %v451_v59, %s3803_s9 }
  0xff   :  { %364 = vrot.lane.b32.xlu1 %v331_v60, %s3802_s8  ;;  %v4002_v63 = vpop.f32.mrb[18].mxu0 }
 0x100   :  { %v4005_v1 = vpop.f32.mrb[19].mxu0  ;;  %v341_v23 = vrot.slane %v4002_v63, 1  ;;  %v461_v26 = vrot.slane %v4002_v63, 2 }
 0x101   :  { %v460_v24 = vrot.slane %v4005_v1, 2  ;;  %v340_v29 = vrot.slane %v4005_v1, 1 }
 0x102   :  { %362 = vrot.lane.b32.xlu0 %v330_v0, %s3802_s8 }
 0x103   :  { %482 = vrot.lane.b32.xlu1 %v450_v2, %s3803_s9  ;;  %v4012_v5 = vpop.f32.mrb[20].mxu0 }
 0x104   :  { %v4014_v6 = vpop.f32.mrb[21].mxu0  ;;  %v343_v25 = vrot.slane %v4012_v5, 1  ;;  %v463_v30 = vrot.slane %v4012_v5, 2 }
 0x105   :  { %v462_v32 = vrot.slane %v4014_v6, 2  ;;  %v342_v34 = vrot.slane %v4014_v6, 1 }
 0x106   :  { %368 = vrot.lane.b32.xlu0 %v333_v3, %s3802_s8 }
 0x107   :  { %486 = vrot.lane.b32.xlu1 %v452_v4, %s3803_s9  ;;  %v4019_v8 = vpop.f32.mrb[22].mxu0 }
 0x108   :  { %v4022_v10 = vpop.f32.mrb[23].mxu0  ;;  %v345_v36 = vrot.slane %v4019_v8, 1  ;;  %v465_v38 = vrot.slane %v4019_v8, 2 }
 0x109   :  { %v464_v39 = vrot.slane %v4022_v10, 2  ;;  %v344_v41 = vrot.slane %v4022_v10, 1 }
 0x10a   :  { %488 = vrot.lane.b32.xlu0 %v453_v9, %s3803_s9 }
 0x10b   :  { %372 = vrot.lane.b32.xlu1 %v335_v7, %s3802_s8 }
 0x10e   :  { %366 = vrot.lane.b32.xlu0 %v332_v11, %s3802_s8 }
 0x10f   :  { %492 = vrot.lane.b32.xlu1 %v455_v12, %s3803_s9 }
 0x112   :  { %490 = vrot.lane.b32.xlu0 %v454_v13, %s3803_s9 }
 0x113   :  { %370 = vrot.lane.b32.xlu1 %v334_v14, %s3802_s8 }
 0x116   :  { %376 = vrot.lane.b32.xlu0 %v337_v15, %s3802_s8 }
 0x117   :  { %496 = vrot.lane.b32.xlu1 %v457_v16, %s3803_s9 }
 0x11a   :  { %494 = vrot.lane.b32.xlu0 %v456_v17, %s3803_s9 }
 0x11b   :  { %374 = vrot.lane.b32.xlu1 %v336_v18, %s3802_s8 }
 0x11e   :  { %500 = vrot.lane.b32.xlu0 %v459_v19, %s3803_s9 }
 0x11f   :  { %380 = vrot.lane.b32.xlu1 %v339_v20, %s3802_s8 }
 0x122   :  { %378 = vrot.lane.b32.xlu0 %v338_v21, %s3802_s8 }
 0x123   :  { %498 = vrot.lane.b32.xlu1 %v458_v22, %s3803_s9 }
 0x126   :  { %384 = vrot.lane.b32.xlu0 %v341_v23, %s3802_s8 }
 0x127   :  { %502 = vrot.lane.b32.xlu1 %v460_v24, %s3803_s9 }
 0x12a   :  { %504 = vrot.lane.b32.xlu0 %v461_v26, %s3803_s9 }
 0x12b   :  { %388 = vrot.lane.b32.xlu1 %v343_v25, %s3802_s8 }
 0x12e   :  { %382 = vrot.lane.b32.xlu0 %v340_v29, %s3802_s8 }
 0x12f   :  { %508 = vrot.lane.b32.xlu1 %v463_v30, %s3803_s9 }
 0x132   :  { %506 = vrot.lane.b32.xlu0 %v462_v32, %s3803_s9 }
 0x133   :  { %386 = vrot.lane.b32.xlu1 %v342_v34, %s3802_s8 }
 0x136   :  { %392 = vrot.lane.b32.xlu0 %v345_v36, %s3802_s8 }
 0x137   :  { %512 = vrot.lane.b32.xlu1 %v465_v38, %s3803_s9 }
 0x13a   :  { %510 = vrot.lane.b32.xlu0 %v464_v39, %s3803_s9  ;;  %v3451_v39 = vld [vmem:[%s5139_s2 + $0x18] sm:$0xff] }
 0x13b   :  { %390 = vrot.lane.b32.xlu1 %v344_v41, %s3802_s8  ;;  %v3452_v41 = vld [vmem:[%s5139_s2 + $0x20] sm:$0xff] }
 0x150   :  { %v349_v44 = vpop.permute.xlu0 %348 }
 0x151   :  { %v467_v46 = vpop.permute.xlu1 %466  ;;  %v419_v48 = vadd.f32 %v3930_v27, %v349_v44  ;;  %v3490_v44 = vld [vmem:[%s5139_s2 + $0x30] sm:$0xff] }
 0x154   :  { %v469_v50 = vpop.permute.xlu0 %468 }
 0x155   :  { %v539_v51 = vadd.f32 %v469_v50, %v419_v48  ;;  %v351_v52 = vpop.permute.xlu1 %350  ;;  %v3743_v50 = vpack.c.bf16 %v3452_v41, %v3451_v39 }
 0x156   :  { %v420_v58 = vadd.f32 %v351_v52, %v3941_v33 }
 0x157   :  { %v587_v56 = vrot.slane %v539_v51, 7  ;;  %v3491_v51 = vld [vmem:[%s5139_s2 + $0x38] sm:$0xff]  ;;  %3744 = vmatprep.subr.bf16.mxu1 %v3743_v50 }
 0x158   :  { %v347_v59 = vpop.permute.xlu0 %346  ;;  %3746 = vmatpush3.bf16.msra.mxu1 %v3743_v50 }
 0x159   :  { %v636_v60 = vsel %vm634_vm1, 0.0, %v587_v56  ;;  %v418_v0 = vadd.f32 %v347_v59, %v3932_v28  ;;  %v471_v2 = vpop.permute.xlu1 %470  ;;  %v4121_v56 = vpack.c.bf16 %v3491_v51, %v3490_v44 }
 0x15a   :  { %v4079_v3 = vsel %vm659_vm2, %v636_v60, 0.0  ;;  %v540_v4 = vadd.f32 %v471_v2, %v420_v58 }
 0x15b   :  { %v538_v7 = vadd.f32 %v467_v46, %v418_v0  ;;  %v811_v27 = vrot.slane %v4079_v3, 2  ;;  %v711_v9 = vrot.slane %v4079_v3, 1  ;;  %3752 = vmatprep.subr.bf16.mxu0 %v4121_v56 }
 0x15c   :  { %v588_v11 = vrot.slane %v540_v4, 7  ;;  %v353_v12 = vpop.permute.xlu0 %352  ;;  %3754 = vmatpush3.bf16.msra.mxu0 %v4121_v56 }
 0x15d   :  { %v586_v13 = vrot.slane %v538_v7, 7  ;;  %v357_v14 = vpop.permute.xlu1 %356  ;;  %838 = vrot.lane.b32.xlu0 %v811_v27, %s3804_s0  ;;  %738 = vrot.lane.b32.xlu1 %v711_v9, %s3805_s10  ;;  %v421_v15 = vadd.f32 %v3938_v31, %v353_v12  ;;  %v3492_v12 = vld [vmem:[%s5139_s2 + $0x40] sm:$0xff] }
 0x15e   :  { %v637_v33 = vsel %vm634_vm1, 0.0, %v588_v11  ;;  %v423_v23 = vadd.f32 %v3946_v35, %v357_v14  ;;  %v3453_v11 = vld [vmem:[%s5139_s2 + $0x28] sm:$0xff]  ;;  %3710 = vmatprep.subr.mxu0 %v3492_v12 }
 0x15f   :  { %v635_v28 = vsel %vm634_vm1, 0.0, %v586_v13  ;;  %v4094_v22 = vsel %vm659_vm2, %v637_v33, 0.0  ;;  %3644 = vmatprep.subr.mxu1 %v3453_v11 }
 0x160   :  { %v4089_v16 = vsel %vm659_vm2, %v635_v28, 0.0  ;;  %v473_v17 = vpop.permute.xlu0 %472  ;;  %v812_v30 = vrot.slane %v4094_v22, 2  ;;  %v712_v13 = vrot.slane %v4094_v22, 1  ;;  %3645 = vmatpush3.msra.mxu1 %v3453_v11  ;;  %3711 = vmatpush3.msra.mxu0 %v3492_v12 }
 0x161   :  { %v541_v18 = vadd.f32 %v473_v17, %v421_v15  ;;  %v477_v19 = vpop.permute.xlu1 %476  ;;  %v710_v20 = vrot.slane %v4089_v16, 1  ;;  %v810_v21 = vrot.slane %v4089_v16, 2 }
 0x162   :  { %v543_v26 = vadd.f32 %v477_v19, %v423_v23 }
 0x163   :  { %v589_v24 = vrot.slane %v541_v18, 7  ;;  %736 = vrot.lane.b32.xlu0 %v710_v20, %s3805_s10  ;;  %836 = vrot.lane.b32.xlu1 %v810_v21, %s3804_s0 }
 0x164   :  { %v475_v31 = vpop.permute.xlu0 %474  ;;  %v591_v46 = vrot.slane %v543_v26, 7 }
 0x165   :  { %v638_v25 = vsel %vm634_vm1, 0.0, %v589_v24  ;;  %v355_v29 = vpop.permute.xlu1 %354 }
 0x166   :  { %v4102_v32 = vsel %vm659_vm2, %v638_v25, 0.0  ;;  %v422_v34 = vadd.f32 %v355_v29, %v3949_v37 }
 0x167   :  { %840 = vrot.lane.b32.xlu1 %v812_v30, %s3804_s0  ;;  %v713_v35 = vrot.slane %v4102_v32, 1  ;;  %v813_v59 = vrot.slane %v4102_v32, 2 }
 0x168   :  { %v542_v36 = vadd.f32 %v475_v31, %v422_v34  ;;  %v361_v38 = vpop.permute.xlu0 %360 }
 0x169   :  { %v425_v37 = vadd.f32 %v3955_v40, %v361_v38  ;;  %v481_v48 = vpop.permute.xlu1 %480  ;;  %742 = vrot.lane.b32.xlu0 %v713_v35, %s3805_s10  ;;  %v640_v40 = vsel %vm634_vm1, 0.0, %v591_v46 }
 0x16a   :  { %v590_v52 = vrot.slane %v542_v36, 7  ;;  %v4142_v14 = vsel %vm659_vm2, %v640_v40, 0.0 }
 0x16b   :  { %v545_v58 = vadd.f32 %v481_v48, %v425_v37  ;;  %v715_v21 = vrot.slane %v4142_v14, 1  ;;  %v815_v34 = vrot.slane %v4142_v14, 2 }
 0x16c   :  { %v639_v60 = vsel %vm634_vm1, 0.0, %v590_v52  ;;  %v479_v0 = vpop.permute.xlu0 %478 }
 0x16d   :  { %v4128_v2 = vsel %vm659_vm2, %v639_v60, 0.0  ;;  %v593_v4 = vrot.slane %v545_v58, 7  ;;  %v359_v7 = vpop.permute.xlu1 %358  ;;  %842 = vrot.lane.b32.xlu0 %v813_v59, %s3804_s0 }
 0x16e   :  { %v424_v27 = vadd.f32 %v359_v7, %v3958_v42  ;;  %v714_v9 = vrot.slane %v4128_v2, 1  ;;  %v814_v19 = vrot.slane %v4128_v2, 2 }
 0x16f   :  { %v642_v28 = vsel %vm634_vm1, 0.0, %v593_v4 }
 0x170   :  { %v544_v42 = vadd.f32 %v479_v0, %v424_v27  ;;  %v485_v33 = vpop.permute.xlu0 %484  ;;  %744 = vrot.lane.b32.xlu1 %v714_v9, %s3805_s10  ;;  %v4150_v20 = vsel %vm659_vm2, %v642_v28, 0.0 }
 0x171   :  { %v365_v15 = vpop.permute.xlu1 %364  ;;  %740 = vrot.lane.b32.xlu0 %v712_v13, %s3805_s10 }
 0x172   :  { %v592_v17 = vrot.slane %v544_v42, 7  ;;  %v427_v18 = vadd.f32 %v3962_v43, %v365_v15  ;;  %v717_v43 = vrot.slane %v4150_v20, 1 }
 0x174   :  { %v547_v23 = vadd.f32 %v485_v33, %v427_v18  ;;  %v363_v24 = vpop.permute.xlu0 %362  ;;  %844 = vrot.lane.b32.xlu1 %v814_v19, %s3804_s0  ;;  %v641_v31 = vsel %vm634_vm1, 0.0, %v592_v17 }
 0x175   :  { %v426_v25 = vadd.f32 %v363_v24, %v3965_v45  ;;  %v483_v26 = vpop.permute.xlu1 %482  ;;  %746 = vrot.lane.b32.xlu0 %v715_v21, %s3805_s10  ;;  %v4160_v35 = vsel %vm659_vm2, %v641_v31, 0.0  ;;  %v817_v45 = vrot.slane %v4150_v20, 2 }
 0x176   :  { %v595_v29 = vrot.slane %v547_v23, 7  ;;  %v816_v46 = vrot.slane %v4160_v35, 2  ;;  %v716_v58 = vrot.slane %v4160_v35, 1 }
 0x177   :  { %v546_v30 = vadd.f32 %v483_v26, %v426_v25 }
 0x178   :  { %v369_v36 = vpop.permute.xlu0 %368  ;;  %750 = vrot.lane.b32.xlu1 %v717_v43, %s3805_s10  ;;  %v644_v38 = vsel %vm634_vm1, 0.0, %v595_v29 }
 0x179   :  { %v594_v39 = vrot.slane %v546_v30, 7  ;;  %v487_v41 = vpop.permute.xlu1 %486  ;;  %846 = vrot.lane.b32.xlu0 %v815_v34, %s3804_s0  ;;  %v429_v44 = vadd.f32 %v3970_v47, %v369_v36  ;;  %v4169_v37 = vsel %vm659_vm2, %v644_v38, 0.0 }
 0x17a   :  { %v819_v60 = vrot.slane %v4169_v37, 2  ;;  %v719_v27 = vrot.slane %v4169_v37, 1 }
 0x17b   :  { %v643_v50 = vsel %vm634_vm1, 0.0, %v594_v39 }
 0x17c   :  { %v489_v48 = vpop.permute.xlu0 %488  ;;  %850 = vrot.lane.b32.xlu1 %v817_v45, %s3804_s0  ;;  %v4177_v47 = vsel %vm659_vm2, %v643_v50, 0.0 }
 0x17d   :  { %v549_v51 = vadd.f32 %v489_v48, %v429_v44  ;;  %v373_v52 = vpop.permute.xlu1 %372  ;;  %848 = vrot.lane.b32.xlu0 %v816_v46, %s3804_s0  ;;  %v718_v12 = vrot.slane %v4177_v47, 1  ;;  %v818_v17 = vrot.slane %v4177_v47, 2 }
 0x17e   :  { %v431_v9 = vadd.f32 %v3980_v53, %v373_v52 }
 0x17f   :  { %v597_v59 = vrot.slane %v549_v51, 7 }
 0x180   :  { %v367_v0 = vpop.permute.xlu0 %366  ;;  %748 = vrot.lane.b32.xlu1 %v716_v58, %s3805_s10 }
 0x181   :  { %v646_v40 = vsel %vm634_vm1, 0.0, %v597_v59  ;;  %v428_v4 = vadd.f32 %v367_v0, %v3973_v49  ;;  %v493_v7 = vpop.permute.xlu1 %492  ;;  %854 = vrot.lane.b32.xlu0 %v819_v60, %s3804_s0 }
 0x182   :  { %v4187_v13 = vsel %vm659_vm2, %v646_v40, 0.0  ;;  %v551_v33 = vadd.f32 %v493_v7, %v431_v9 }
 0x183   :  { %v548_v11 = vadd.f32 %v487_v41, %v428_v4  ;;  %v721_v18 = vrot.slane %v4187_v13, 1  ;;  %v821_v43 = vrot.slane %v4187_v13, 2 }
 0x184   :  { %v491_v28 = vpop.permute.xlu0 %490  ;;  %754 = vrot.lane.b32.xlu1 %v719_v27, %s3805_s10  ;;  %v599_v24 = vrot.slane %v551_v33, 7 }
 0x185   :  { %v596_v42 = vrot.slane %v548_v11, 7  ;;  %v371_v15 = vpop.permute.xlu1 %370  ;;  %752 = vrot.lane.b32.xlu0 %v718_v12, %s3805_s10 }
 0x186   :  { %v430_v49 = vadd.f32 %v371_v15, %v3982_v54  ;;  %v648_v36 = vsel %vm634_vm1, 0.0, %v599_v24 }
 0x187   :  { %v645_v53 = vsel %vm634_vm1, 0.0, %v596_v42  ;;  %v4214_v46 = vsel %vm659_vm2, %v648_v36, 0.0 }
 0x188   :  { %v4196_v19 = vsel %vm659_vm2, %v645_v53, 0.0  ;;  %v550_v21 = vadd.f32 %v491_v28, %v430_v49  ;;  %v377_v23 = vpop.permute.xlu0 %376  ;;  %852 = vrot.lane.b32.xlu1 %v818_v17, %s3804_s0  ;;  %v723_v0 = vrot.slane %v4214_v46, 1  ;;  %v823_v28 = vrot.slane %v4214_v46, 2 }
 0x189   :  { %v433_v31 = vadd.f32 %v3986_v55, %v377_v23  ;;  %v497_v25 = vpop.permute.xlu1 %496  ;;  %758 = vrot.lane.b32.xlu0 %v721_v18, %s3805_s10  ;;  %v820_v54 = vrot.slane %v4196_v19, 2  ;;  %v720_v44 = vrot.slane %v4196_v19, 1 }
 0x18a   :  { %v598_v26 = vrot.slane %v550_v21, 7 }
 0x18b   :  { %v553_v29 = vadd.f32 %v497_v25, %v433_v31 }
 0x18c   :  { %v647_v30 = vsel %vm634_vm1, 0.0, %v598_v26  ;;  %v495_v34 = vpop.permute.xlu0 %494  ;;  %856 = vrot.lane.b32.xlu1 %v820_v54, %s3804_s0 }
 0x18d   :  { %v4207_v38 = vsel %vm659_vm2, %v647_v30, 0.0  ;;  %v601_v55 = vrot.slane %v553_v29, 7  ;;  %v375_v39 = vpop.permute.xlu1 %374  ;;  %858 = vrot.lane.b32.xlu0 %v821_v43, %s3804_s0 }
 0x18e   :  { %v432_v41 = vadd.f32 %v375_v39, %v3989_v57  ;;  %v722_v45 = vrot.slane %v4207_v38, 1  ;;  %v822_v57 = vrot.slane %v4207_v38, 2  ;;  %v1317_v39 = vld [vmem:[%s5139_s2] sm:$0xff] }
 0x18f   :  { %v650_v48 = vsel %vm634_vm1, 0.0, %v601_v55 }
 0x190   :  { %v552_v50 = vadd.f32 %v495_v34, %v432_v41  ;;  %v501_v51 = vpop.permute.xlu0 %500  ;;  %760 = vrot.lane.b32.xlu1 %v722_v45, %s3805_s10  ;;  %v4222_v60 = vsel %vm659_vm2, %v650_v48, 0.0  ;;  %v1318_v41 = vld [vmem:[%s5139_s2 + $0x8] sm:$0xff] }
 0x191   :  { %v381_v52 = vpop.permute.xlu1 %380  ;;  %756 = vrot.lane.b32.xlu0 %v720_v44, %s3805_s10 }
 0x192   :  { %v600_v58 = vrot.slane %v552_v50, 7  ;;  %v435_v59 = vadd.f32 %v3996_v61, %v381_v52  ;;  %v725_v61 = vrot.slane %v4222_v60, 1  ;;  %v4264_v50 = vpack.c.bf16 %v1318_v41, %v1317_v39 }
 0x194   :  { %v555_v40 = vadd.f32 %v501_v51, %v435_v59  ;;  %v379_v4 = vpop.permute.xlu0 %378  ;;  %860 = vrot.lane.b32.xlu1 %v822_v57, %s3804_s0  ;;  %v649_v7 = vsel %vm634_vm1, 0.0, %v600_v58  ;;  %3748 = vmatprep.subr.bf16.mxu1 %v4264_v50 }
 0x195   :  { %v434_v27 = vadd.f32 %v379_v4, %v3998_v62  ;;  %v499_v9 = vpop.permute.xlu1 %498  ;;  %762 = vrot.lane.b32.xlu0 %v723_v0, %s3805_s10  ;;  %v4232_v42 = vsel %vm659_vm2, %v649_v7, 0.0  ;;  %v825_v62 = vrot.slane %v4222_v60, 2 }
 0x196   :  { %v603_v11 = vrot.slane %v555_v40, 7  ;;  %v824_v18 = vrot.slane %v4232_v42, 2  ;;  %v724_v54 = vrot.slane %v4232_v42, 1 }
 0x197   :  { %v554_v12 = vadd.f32 %v499_v9, %v434_v27 }
 0x198   :  { %v385_v33 = vpop.permute.xlu0 %384  ;;  %766 = vrot.lane.b32.xlu1 %v725_v61, %s3805_s10  ;;  %v652_v15 = vsel %vm634_vm1, 0.0, %v603_v11 }
 0x199   :  { %v602_v49 = vrot.slane %v554_v12, 7  ;;  %v503_v17 = vpop.permute.xlu1 %502  ;;  %862 = vrot.lane.b32.xlu0 %v823_v28, %s3804_s0  ;;  %v437_v53 = vadd.f32 %v4002_v63, %v385_v33  ;;  %v4241_v21 = vsel %vm659_vm2, %v652_v15, 0.0 }
 0x19a   :  { %v827_v29 = vrot.slane %v4241_v21, 2  ;;  %v727_v55 = vrot.slane %v4241_v21, 1 }
 0x19b   :  { %v651_v24 = vsel %vm634_vm1, 0.0, %v602_v49 }
 0x19c   :  { %v505_v23 = vpop.permute.xlu0 %504  ;;  %866 = vrot.lane.b32.xlu1 %v825_v62, %s3804_s0  ;;  %v4249_v63 = vsel %vm659_vm2, %v651_v24, 0.0 }
 0x19d   :  { %v557_v31 = vadd.f32 %v505_v23, %v437_v53  ;;  %v389_v25 = vpop.permute.xlu1 %388  ;;  %864 = vrot.lane.b32.xlu0 %v824_v18, %s3804_s0  ;;  %v726_v48 = vrot.slane %v4249_v63, 1  ;;  %v826_v57 = vrot.slane %v4249_v63, 2 }
 0x19e   :  { %v439_v45 = vadd.f32 %v4012_v5, %v389_v25 }
 0x19f   :  { %v605_v26 = vrot.slane %v557_v31, 7 }
 0x1a0   :  { %v383_v43 = vpop.permute.xlu0 %382  ;;  %764 = vrot.lane.b32.xlu1 %v724_v54, %s3805_s10 }
 0x1a1   :  { %v654_v30 = vsel %vm634_vm1, 0.0, %v605_v26  ;;  %v436_v34 = vadd.f32 %v383_v43, %v4005_v1  ;;  %v509_v36 = vpop.permute.xlu1 %508  ;;  %870 = vrot.lane.b32.xlu0 %v827_v29, %s3804_s0 }
 0x1a2   :  { %v4267_v1 = vsel %vm659_vm2, %v654_v30, 0.0  ;;  %v559_v58 = vadd.f32 %v509_v36, %v439_v45  ;;  %v3806_v45 = vmov 0.0  }
 0x1a3   :  { %v556_v44 = vadd.f32 %v503_v17, %v436_v34  ;;  %v729_v40 = vrot.slane %v4267_v1, 1  ;;  %v829_v33 = vrot.slane %v4267_v1, 2 }
 0x1a4   :  { %v507_v51 = vpop.permute.xlu0 %506  ;;  %770 = vrot.lane.b32.xlu1 %v727_v55, %s3805_s10  ;;  %v607_v9 = vrot.slane %v559_v58, 7 }
 0x1a5   :  { %v604_v52 = vrot.slane %v556_v44, 7  ;;  %v387_v59 = vpop.permute.xlu1 %386  ;;  %768 = vrot.lane.b32.xlu0 %v726_v48, %s3805_s10  ;;  %v709_v44 = vrot.slane %v3806_v45, 1 }
 0x1a6   :  { %v438_v5 = vadd.f32 %v387_v59, %v4014_v6  ;;  %v656_v49 = vsel %vm634_vm1, 0.0, %v607_v9  ;;  %v985_v59 = vlaneseq }
 0x1a7   :  { %v653_v0 = vsel %vm634_vm1, 0.0, %v604_v52  ;;  %v4295_v31 = vsel %vm659_vm2, %v656_v49, 0.0  ;;  %v3807_v52 = vmov 1983009808  }
 0x1a8   :  { %v4277_v4 = vsel %vm659_vm2, %v653_v0, 0.0  ;;  %v558_v7 = vadd.f32 %v507_v51, %v438_v5  ;;  %v393_v27 = vpop.permute.xlu0 %392  ;;  %868 = vrot.lane.b32.xlu1 %v826_v57, %s3804_s0  ;;  %v731_v43 = vrot.slane %v4295_v31, 1  ;;  %v831_v55 = vrot.slane %v4295_v31, 2 }
 0x1a9   :  { %v441_v11 = vadd.f32 %v4019_v8, %v393_v27  ;;  %v513_v61 = vpop.permute.xlu1 %512  ;;  %774 = vrot.lane.b32.xlu0 %v729_v40, %s3805_s10  ;;  %v828_v6 = vrot.slane %v4277_v4, 2  ;;  %v728_v24 = vrot.slane %v4277_v4, 1  ;;  %v809_v51 = vrot.slane %v3806_v45, 2 }
 0x1aa   :  { %v606_v12 = vrot.slane %v558_v7, 7  ;;  %v983_v58 = vunpack.c.l.s4 %v3807_v52  ;;  %v986_v57 = vshrl.u32 %v985_v59, 7 }
 0x1ab   :  { %v561_v28 = vadd.f32 %v513_v61, %v441_v11 }
 0x1ac   :  { %v655_v15 = vsel %vm634_vm1, 0.0, %v606_v12  ;;  %872 = vrot.lane.b32.xlu1 %v828_v6, %s3804_s0  ;;  %v511_v23 = vpop.permute.xlu0 %510  ;;  %v984_v5 = vunpack.c.0.s8 %v983_v58 }
 0x1ad   :  { %v4288_v17 = vsel %vm659_vm2, %v655_v15, 0.0  ;;  %v609_v62 = vrot.slane %v561_v28, 7  ;;  %874 = vrot.lane.b32.xlu0 %v829_v33, %s3804_s0  ;;  %v391_v8 = vpop.permute.xlu1 %390 }
 0x1ae   :  { %v440_v53 = vadd.f32 %v391_v8, %v4022_v10  ;;  %v730_v18 = vrot.slane %v4288_v17, 1  ;;  %v830_v29 = vrot.slane %v4288_v17, 2  ;;  %v4323_v0 = vsub.s32 %v984_v5, %v986_v57 }
 0x1af   :  { %v658_v25 = vsel %vm634_vm1, 0.0, %v609_v62 }
 0x1b0   :  { %v560_v54 = vadd.f32 %v511_v23, %v440_v53  ;;  %776 = vrot.lane.b32.xlu1 %v730_v18, %s3805_s10  ;;  %v4302_v10 = vsel %vm659_vm2, %v658_v25, 0.0 }
 0x1b1   :  { %772 = vrot.lane.b32.xlu0 %v728_v24, %s3805_s10  ;;  %v733_v34 = vrot.slane %v4302_v10, 1  ;;  %v833_v48 = vrot.slane %v4302_v10, 2 }
 0x1b2   :  { %v608_v26 = vrot.slane %v560_v54, 7 }
 0x1b4   :  { %v657_v30 = vsel %vm634_vm1, 0.0, %v608_v26  ;;  %876 = vrot.lane.b32.xlu1 %v830_v29, %s3804_s0 }
 0x1b5   :  { %778 = vrot.lane.b32.xlu0 %v731_v43, %s3805_s10  ;;  %v4310_v36 = vsel %vm659_vm2, %v657_v30, 0.0 }
 0x1b6   :  { %v732_v39 = vrot.slane %v4310_v36, 1  ;;  %v832_v41 = vrot.slane %v4310_v36, 2 }
 0x1b8   :  { %782 = vrot.lane.b32.xlu1 %v733_v34, %s3805_s10 }
 0x1b9   :  { %878 = vrot.lane.b32.xlu0 %v831_v55, %s3804_s0 }
 0x1bc   :  { %780 = vrot.lane.b32.xlu1 %v732_v39, %s3805_s10 }
 0x1bd   :  { %880 = vrot.lane.b32.xlu0 %v832_v41, %s3804_s0 }
 0x1c0   :  { %882 = vrot.lane.b32.xlu1 %v833_v48, %s3804_s0 }
 0x1c1   :  { %734 = vrot.lane.b32.xlu0 %v709_v44, %s3805_s10 }
 0x1c4   :  { %834 = vrot.lane.b32.xlu1 %v809_v51, %s3804_s0 }
 0x1cf   :  { %v839_v40 = vpop.permute.xlu0 %838  ;;  %v739_v7 = vpop.permute.xlu1 %738 }
 0x1d0   :  { %v912_v27 = vsel %vm909_vm3, %v4079_v3, %v739_v7 }
 0x1d1   :  { %v937_v9 = vsel %vm40_vm0, %v912_v27, %v839_v40 }
 0x1d2   :  { %v1020_v11 = vrot.slane %v937_v9, %v4323_v0  ;;  %v1013_v25 = vcombine.high %v937_v9, %v937_v9 }
 0x1d4   :  { %v1028_v12 = vcombine.high %v1020_v11, %v1020_v11  ;;  %v1027_v45 = vrot.slane %v1013_v25, %v4323_v0 }
 0x1d5   :  { %v737_v61 = vpop.permute.xlu0 %736  ;;  %v837_v6 = vpop.permute.xlu1 %836 }
 0x1d6   :  { %v911_v28 = vsel %vm909_vm3, %v4089_v16, %v737_v61  ;;  %v1908_v62 = vcombine.low %v1020_v11, %v1028_v12  ;;  %v1409_v5 = vcombine.low %v1028_v12, %v1027_v45 }
 0x1d7   :  { %v936_v33 = vsel %vm40_vm0, %v911_v28, %v837_v6 }
 0x1d8   :  { %v997_v15 = vcombine.high %v936_v33, %v936_v33  ;;  %v4333_v49 = vrot.slane %v936_v33, %v4323_v0  ;;  %v4345_v43 = vrot.slane %v1908_v62, %v4323_v0 }
 0x1d9   :  { %v841_v54 = vpop.permute.xlu1 %840 }
 0x1da   :  { %v1011_v8 = vrot.slane %v997_v15, %v4323_v0  ;;  %v1012_v3 = vcombine.high %v4333_v49, %v4333_v49 }
 0x1db   :  { %v743_v53 = vpop.permute.xlu0 %742 }
 0x1dc   :  { %v1907_v18 = vcombine.low %v1012_v3, %v1011_v8  ;;  %v1392_v23 = vcombine.low %v4333_v49, %v1012_v3  ;;  %v1393_v24 = vcombine.low %v1011_v8, %v1020_v11  ;;  %v914_v30 = vsel %vm909_vm3, %v4102_v32, %v743_v53 }
 0x1de   :  { %v4340_v16 = vrot.slane %v1907_v18, %v4323_v0  ;;  %v1400_v26 = vrot.slane %v1392_v23, %v4323_v0  ;;  %v1407_v29 = vrot.slane %v1393_v24, %v4323_v0 }
 0x1df   :  { %v843_v34 = vpop.permute.xlu0 %842 }
 0x1e0   :  { %v939_v55 = vsel %vm40_vm0, %v914_v30, %v843_v34  ;;  %v1408_v39 = vcombine.low %v1400_v26, %v1407_v29 }
 0x1e1   :  { %v1045_v44 = vcombine.high %v939_v55, %v939_v55  ;;  %v1052_v48 = vrot.slane %v939_v55, %v4323_v0 }
 0x1e2   :  { %3646 = vmatprep.mubr.msk.f32.mxu1 %vm1698_vm4, %v1408_v39  ;;  %v745_v51 = vpop.permute.xlu1 %744 }
 0x1e3   :  { %v1059_v52 = vrot.slane %v1045_v44, %v4323_v0  ;;  %v1060_v58 = vcombine.high %v1052_v48, %v1052_v48  ;;  %v741_v32 = vpop.permute.xlu0 %740  ;;  %v915_v27 = vsel %vm909_vm3, %v4128_v2, %v745_v51  ;;  %v1417_v2 = vrot.slane %v1409_v5, %v4323_v0 }
 0x1e4   :  { %v913_v59 = vsel %vm909_vm3, %v4094_v22, %v741_v32 }
 0x1e5   :  { %v1427_v57 = vcombine.low %v1060_v58, %v1059_v52  ;;  %v1941_v40 = vcombine.low %v1052_v48, %v1060_v58  ;;  %v938_v7 = vsel %vm40_vm0, %v913_v59, %v841_v54 }
 0x1e6   :  { %v1029_v9 = vcombine.high %v938_v7, %v938_v7  ;;  %v1036_v11 = vrot.slane %v938_v7, %v4323_v0  ;;  %v845_v61 = vpop.permute.xlu1 %844 }
 0x1e7   :  { %v940_v6 = vsel %vm40_vm0, %v915_v27, %v845_v61  ;;  %v747_v28 = vpop.permute.xlu0 %746  ;;  %v1441_v12 = vrot.slane %v1427_v57, %v4323_v0  ;;  %v4366_v8 = vrot.slane %v1941_v40, %v4323_v0 }
 0x1e8   :  { %v1043_v33 = vrot.slane %v1029_v9, %v4323_v0  ;;  %v1044_v15 = vcombine.high %v1036_v11, %v1036_v11  ;;  %v1924_v62 = vcombine.low %v1027_v45, %v1036_v11  ;;  %v1061_v22 = vcombine.high %v940_v6, %v940_v6 }
 0x1e9   :  { %v1068_v3 = vrot.slane %v940_v6, %v4323_v0  ;;  %v916_v29 = vsel %vm909_vm3, %v4142_v14, %v747_v28 }
 0x1ea   :  { %v1410_v53 = vcombine.low %v1036_v11, %v1044_v15  ;;  %v1426_v18 = vcombine.low %v1043_v33, %v1052_v48  ;;  %v1925_v23 = vcombine.low %v1044_v15, %v1043_v33  ;;  %v1075_v24 = vrot.slane %v1061_v22, %v4323_v0  ;;  %v751_v25 = vpop.permute.xlu1 %750 }
 0x1eb   :  { %v1076_v54 = vcombine.high %v1068_v3, %v1068_v3  ;;  %v1942_v26 = vcombine.low %v1059_v52, %v1068_v3  ;;  %v847_v30 = vpop.permute.xlu0 %846  ;;  %v4374_v34 = vrot.slane %v1924_v62, %v4323_v0  ;;  %v918_v39 = vsel %vm909_vm3, %v4150_v20, %v751_v25  ;;  %v1319_v62 = vld [vmem:[%s5139_s2 + $0x10] sm:$0xff] }
 0x1ec   :  { %v4377_v55 = vrot.slane %v1925_v23, %v4323_v0  ;;  %v941_v45 = vsel %vm40_vm0, %v916_v29, %v847_v30  ;;  %v1424_v44 = vrot.slane %v1410_v53, %v4323_v0  ;;  %v1434_v58 = vrot.slane %v1426_v18, %v4323_v0 }
 0x1ed   :  { %v1443_v48 = vcombine.low %v1068_v3, %v1076_v54  ;;  %v1958_v51 = vcombine.low %v1076_v54, %v1075_v24  ;;  %v1324_v52 = vcombine.high %v941_v45, %v941_v45  ;;  %v4387_v32 = vrot.slane %v941_v45, %v4323_v0 }
 0x1ee   :  { %v2368_v14 = vcombine.low %v4377_v55, %v4366_v8  ;;  %v2367_v59 = vcombine.low %v4345_v43, %v4374_v34  ;;  %v851_v5 = vpop.permute.xlu1 %850  ;;  %v1425_v20 = vcombine.low %v1417_v2, %v1424_v44  ;;  %v4393_v40 = vrot.slane %v1942_v26, %v4323_v0 }
 0x1ef   :  { %v1451_v57 = vrot.slane %v1443_v48, %v4323_v0  ;;  %v4396_v7 = vrot.slane %v1958_v51, %v4323_v0  ;;  %v943_v27 = vsel %vm40_vm0, %v918_v39, %v851_v5  ;;  %v849_v9 = vpop.permute.xlu0 %848  ;;  %v4401_v11 = vcombine.high %v4387_v32, %v4387_v32 }
 0x1f0   :  { %v1444_v61 = vcombine.low %v1075_v24, %v4387_v32  ;;  %3712 = vmatprep.mubr.msk.f32.mxu0 %vm1698_vm4, %v2367_v59  ;;  %v1093_v6 = vcombine.high %v943_v27, %v943_v27  ;;  %v4406_v28 = vrot.slane %v943_v27, %v4323_v0  ;;  %3647 = vmatmul.mubr.msk.f32.vlgmr.msra.gmra.mrb[0].mxu1 %vm1698_vm4, %v1425_v20 }
 0x1f1   :  { %3713 = vmatmul.mubr.msk.f32.vlgmr.msra.gmra.mrb[24].mxu0 %vm1698_vm4, %v2368_v14  ;;  %v1442_v33 = vcombine.low %v1434_v58, %v1441_v12  ;;  %v2369_v15 = vcombine.low %v4393_v40, %v4396_v7  ;;  %v4418_v3 = vrot.slane %v1324_v52, %v4323_v0  ;;  %3750 = vmatpush3.bf16.msra.mxu1 %v4264_v50 }
 0x1f2   :  { %v1458_v2 = vrot.slane %v1444_v61, %v4323_v0  ;;  %v1107_v12 = vrot.slane %v1093_v6, %v4323_v0  ;;  %v749_v18 = vpop.permute.xlu1 %748  ;;  %v1108_v23 = vcombine.high %v4406_v28, %v4406_v28  ;;  %3677 = vmatprep.subr.mxu1 %v1319_v62 }
 0x1f3   :  { %3649 = vmatprep.mubr.msk.f32.mxu1 %vm1698_vm4, %v1442_v33  ;;  %3715 = vmatprep.mubr.msk.f32.mxu0 %vm1698_vm4, %v2369_v15  ;;  %v917_v24 = vsel %vm909_vm3, %v4160_v35, %v749_v18  ;;  %v855_v25 = vpop.permute.xlu0 %854  ;;  %v1460_v45 = vcombine.low %v4401_v11, %v4418_v3 }
 0x1f4   :  { %v942_v26 = vsel %vm40_vm0, %v917_v24, %v849_v9  ;;  %v1459_v29 = vcombine.low %v1451_v57, %v1458_v2  ;;  %v1984_v50 = vcombine.low %v4406_v28, %v1108_v23  ;;  %v1478_v44 = vcombine.low %v1108_v23, %v1107_v12 }
 0x1f5   :  { %v1077_v30 = vcombine.high %v942_v26, %v942_v26  ;;  %v4436_v39 = vrot.slane %v942_v26, %v4323_v0  ;;  %3678 = vmatpush3.msra.mxu1 %v1319_v62  ;;  %v1468_v57 = vrot.slane %v1460_v45, %v4323_v0 }
 0x1f6   :  { %3650 = vmatmul.mubr.msk.f32.gmra.mrb[2].mxu1 %vm1698_vm4, %v1459_v29  ;;  %v755_v35 = vpop.permute.xlu1 %754  ;;  %3755 = vmatprep.subr.bf16.mxu1 %v4121_v56  ;;  %v1492_v61 = vrot.slane %v1478_v44, %v4323_v0 }
 0x1f7   :  { %v4442_v48 = vrot.slane %v1077_v30, %v4323_v0  ;;  %v4446_v51 = vcombine.high %v4436_v39, %v4436_v39  ;;  %v753_v52 = vpop.permute.xlu0 %752  ;;  %v920_v58 = vsel %vm909_vm3, %v4169_v37, %v755_v35 }
 0x1f8   :  { %v945_v20 = vsel %vm40_vm0, %v920_v58, %v855_v25  ;;  %v919_v37 = vsel %vm909_vm3, %v4177_v47, %v753_v52 }
 0x1f9   :  { %v1461_v14 = vcombine.low %v4436_v39, %v4446_v51  ;;  %v1477_v59 = vcombine.low %v4442_v48, %v4406_v28  ;;  %v1132_v27 = vrot.slane %v945_v20, %v4323_v0  ;;  %v1125_v30 = vcombine.high %v945_v20, %v945_v20 }
 0x1fa   :  { %v853_v9 = vpop.permute.xlu1 %852 }
 0x1fb   :  { %v944_v6 = vsel %vm40_vm0, %v919_v37, %v853_v9  ;;  %v759_v33 = vpop.permute.xlu0 %758  ;;  %v1475_v28 = vrot.slane %v1461_v14, %v4323_v0  ;;  %v1485_v15 = vrot.slane %v1477_v59, %v4323_v0  ;;  %v1140_v62 = vcombine.high %v1132_v27, %v1132_v27 }
 0x1fc   :  { %v1109_v2 = vcombine.high %v944_v6, %v944_v6  ;;  %v1116_v18 = vrot.slane %v944_v6, %v4323_v0  ;;  %v922_v35 = vsel %vm909_vm3, %v4187_v13, %v759_v33 }
 0x1fd   :  { %v1476_v23 = vcombine.low %v1468_v57, %v1475_v28  ;;  %v1493_v24 = vcombine.low %v1485_v15, %v1492_v61  ;;  %v2002_v25 = vcombine.low %v1132_v27, %v1140_v62  ;;  %v4474_v57 = vrot.slane %v1984_v50, %v4323_v0 }
 0x1fe   :  { %v1123_v26 = vrot.slane %v1109_v2, %v4323_v0  ;;  %v1124_v47 = vcombine.high %v1116_v18, %v1116_v18  ;;  %v857_v29 = vpop.permute.xlu1 %856  ;;  %v1985_v45 = vcombine.low %v1107_v12, %v1116_v18  ;;  %v4491_v50 = vrot.slane %v1125_v30, %v4323_v0 }
 0x1ff   :  { %v859_v44 = vpop.permute.xlu0 %858  ;;  %3652 = vmatprep.mubr.msk.f32.mxu1 %vm1698_vm4, %v1476_v23  ;;  %v4488_v6 = vrot.slane %v2002_v25, %v4323_v0 }
 0x200   :  { %v1494_v52 = vcombine.low %v1116_v18, %v1124_v47  ;;  %v1495_v58 = vcombine.low %v1123_v26, %v1132_v27  ;;  %v2001_v14 = vcombine.low %v1124_v47, %v1123_v26  ;;  %v947_v59 = vsel %vm40_vm0, %v922_v35, %v859_v44  ;;  %3653 = vmatmul.mubr.msk.f32.gmra.mrb[4].mxu1 %vm1698_vm4, %v1493_v24 }
 0x201   :  { %v4477_v37 = vrot.slane %v1985_v45, %v4323_v0  ;;  %v1340_v12 = vcombine.high %v947_v59, %v947_v59  ;;  %v4480_v20 = vrot.slane %v947_v59, %v4323_v0 }
 0x202   :  { %v1502_v13 = vrot.slane %v1494_v52, %v4323_v0  ;;  %v1509_v9 = vrot.slane %v1495_v58, %v4323_v0  ;;  %v4485_v27 = vrot.slane %v2001_v14, %v4323_v0  ;;  %v761_v61 = vpop.permute.xlu1 %760 }
 0x203   :  { %v4494_v33 = vrot.slane %v1340_v12, %v4323_v0  ;;  %v4498_v28 = vcombine.high %v4480_v20, %v4480_v20  ;;  %v757_v15 = vpop.permute.xlu0 %756  ;;  %v923_v47 = vsel %vm909_vm3, %v4207_v38, %v761_v61 }
 0x204   :  { %v921_v18 = vsel %vm909_vm3, %v4196_v19, %v757_v15  ;;  %v1510_v23 = vcombine.low %v1502_v13, %v1509_v9  ;;  %v1511_v19 = vcombine.low %v1140_v62, %v4491_v50 }
 0x205   :  { %v946_v26 = vsel %vm40_vm0, %v921_v18, %v857_v29  ;;  %v1529_v58 = vcombine.low %v4498_v28, %v4494_v33 }
 0x206   :  { %v1141_v30 = vcombine.high %v946_v26, %v946_v26  ;;  %v4512_v45 = vrot.slane %v946_v26, %v4323_v0  ;;  %3655 = vmatprep.mubr.msk.f32.mxu1 %vm1698_vm4, %v1510_v23  ;;  %v861_v35 = vpop.permute.xlu1 %860  ;;  %v1519_v23 = vrot.slane %v1511_v19, %v4323_v0 }
 0x207   :  { %v948_v44 = vsel %vm40_vm0, %v923_v47, %v861_v35  ;;  %v763_v52 = vpop.permute.xlu0 %762  ;;  %v1543_v26 = vrot.slane %v1529_v58, %v4323_v0 }
 0x208   :  { %v4520_v29 = vrot.slane %v1141_v30, %v4323_v0  ;;  %v4524_v38 = vcombine.high %v4512_v45, %v4512_v45  ;;  %v1157_v14 = vcombine.high %v948_v44, %v948_v44  ;;  %v4527_v59 = vrot.slane %v948_v44, %v4323_v0 }
 0x209   :  { %v924_v15 = vsel %vm909_vm3, %v4214_v46, %v763_v52 }
 0x20a   :  { %v1512_v62 = vcombine.low %v4512_v45, %v4524_v38  ;;  %v1528_v12 = vcombine.low %v4520_v29, %v4480_v20  ;;  %v4534_v13 = vrot.slane %v1157_v14, %v4323_v0  ;;  %v767_v9 = vpop.permute.xlu1 %766  ;;  %v4538_v61 = vcombine.high %v4527_v59, %v4527_v59 }
 0x20b   :  { %v863_v18 = vpop.permute.xlu0 %862  ;;  %v926_v58 = vsel %vm909_vm3, %v4222_v60, %v767_v9 }
 0x20c   :  { %5156 = vst [vmem:[#allocation2_spill] sm:$0xff] %v4534_v13  ;;  %5157 = vst [vmem:[#allocation3_spill] sm:$0xff] %v4538_v61  ;;  %v949_v47 = vsel %vm40_vm0, %v924_v15, %v863_v18  ;;  %v1526_v30 = vrot.slane %v1512_v62, %v4323_v0  ;;  %v1536_v35 = vrot.slane %v1528_v12, %v4323_v0 }
 0x20d   :  { %v4550_v14 = vrot.slane %v949_v47, %v4323_v0  ;;  %v1545_v46 = vcombine.low %v4527_v59, %v4538_v61  ;;  %v1173_v18 = vcombine.high %v949_v47, %v949_v47 }
 0x20e   :  { %v867_v52 = vpop.permute.xlu1 %866  ;;  %v1527_v25 = vcombine.low %v1519_v23, %v1526_v30  ;;  %v1544_v19 = vcombine.low %v1536_v35, %v1543_v26 }
 0x20f   :  { %v865_v15 = vpop.permute.xlu0 %864  ;;  %v1546_v62 = vcombine.low %v4534_v13, %v4550_v14  ;;  %v951_v12 = vsel %vm40_vm0, %v926_v58, %v867_v52  ;;  %v1553_v23 = vrot.slane %v1545_v46, %v4323_v0  ;;  %v4567_v47 = vrot.slane %v1173_v18, %v4323_v0 }
 0x210   :  { %3656 = vmatmul.mubr.msk.f32.gmra.mrb[6].mxu1 %vm1698_vm4, %v1527_v25  ;;  %v1205_v44 = vcombine.high %v951_v12, %v951_v12  ;;  %v4561_v2 = vrot.slane %v951_v12, %v4323_v0  ;;  %v4571_v30 = vcombine.high %v4550_v14, %v4550_v14 }
 0x211   :  { %3658 = vmatprep.mubr.msk.f32.mxu1 %vm1698_vm4, %v1544_v19  ;;  %v1560_v26 = vrot.slane %v1546_v62, %v4323_v0 }
 0x212   :  { %v765_v60 = vpop.permute.xlu1 %764  ;;  %v4576_v52 = vrot.slane %v1205_v44, %v4323_v0  ;;  %v4580_v46 = vcombine.high %v4561_v2, %v4561_v2 }
 0x213   :  { %v871_v9 = vpop.permute.xlu0 %870  ;;  %v925_v25 = vsel %vm909_vm3, %v4232_v42, %v765_v60  ;;  %v1561_v35 = vcombine.low %v1553_v23, %v1560_v26  ;;  %v1562_v42 = vcombine.low %v4571_v30, %v4567_v47 }
 0x214   :  { %v950_v19 = vsel %vm40_vm0, %v925_v25, %v865_v15  ;;  %v1580_v26 = vcombine.low %v4580_v46, %v4576_v52 }
 0x215   :  { %v1189_v58 = vcombine.high %v950_v19, %v950_v19  ;;  %v4584_v18 = vrot.slane %v950_v19, %v4323_v0  ;;  %3659 = vmatmul.mubr.msk.f32.gmra.mrb[8].mxu1 %vm1698_vm4, %v1561_v35 }
 0x216   :  { %v771_v62 = vpop.permute.xlu1 %770  ;;  %v1594_v41 = vrot.slane %v1580_v26, %v4323_v0 }
 0x217   :  { %v769_v12 = vpop.permute.xlu0 %768  ;;  %v4590_v44 = vrot.slane %v1189_v58, %v4323_v0  ;;  %v4594_v23 = vcombine.high %v4584_v18, %v4584_v18  ;;  %v928_v15 = vsel %vm909_vm3, %v4241_v21, %v771_v62  ;;  %v1570_v21 = vrot.slane %v1562_v42, %v4323_v0 }
 0x218   :  { %v927_v35 = vsel %vm909_vm3, %v4249_v63, %v769_v12  ;;  %v953_v58 = vsel %vm40_vm0, %v928_v15, %v871_v9 }
 0x219   :  { %v1563_v60 = vcombine.low %v4584_v18, %v4594_v23  ;;  %v1579_v25 = vcombine.low %v4590_v44, %v4561_v2  ;;  %v4616_v63 = vrot.slane %v953_v58, %v4323_v0 }
 0x21a   :  { %v869_v19 = vpop.permute.xlu1 %868 }
 0x21b   :  { %v952_v5 = vsel %vm40_vm0, %v927_v35, %v869_v19  ;;  %v775_v54 = vpop.permute.xlu0 %774  ;;  %v1577_v22 = vrot.slane %v1563_v60, %v4323_v0  ;;  %v1587_v53 = vrot.slane %v1579_v25, %v4323_v0  ;;  %5158 = vst [vmem:[#allocation4_spill] sm:$0xff] %v4616_v63  ;;  %v4641_v13 = vcombine.high %v4616_v63, %v4616_v63 }
 0x21c   :  { %v1221_v62 = vcombine.high %v952_v5, %v952_v5  ;;  %v4610_v24 = vrot.slane %v952_v5, %v4323_v0  ;;  %v1356_v5 = vcombine.high %v953_v58, %v953_v58  ;;  %v930_v25 = vsel %vm909_vm3, %v4267_v1, %v775_v54 }
 0x21d   :  { %v1578_v15 = vcombine.low %v1570_v21, %v1577_v22  ;;  %v1595_v19 = vcombine.low %v1587_v53, %v1594_v41 }
 0x21e   :  { %v4619_v9 = vrot.slane %v1221_v62, %v4323_v0  ;;  %v4623_v12 = vcombine.high %v4610_v24, %v4610_v24  ;;  %v873_v42 = vpop.permute.xlu1 %872  ;;  %v4637_v21 = vrot.slane %v1356_v5, %v4323_v0 }
 0x21f   :  { %v875_v35 = vpop.permute.xlu0 %874  ;;  %3661 = vmatprep.mubr.msk.f32.mxu1 %vm1698_vm4, %v1578_v15 }
 0x220   :  { %v1596_v26 = vcombine.low %v4610_v24, %v4623_v12  ;;  %v1597_v60 = vcombine.low %v4619_v9, %v4616_v63  ;;  %v955_v62 = vsel %vm40_vm0, %v930_v25, %v875_v35  ;;  %3662 = vmatmul.mubr.msk.f32.gmra.mrb[10].mxu1 %vm1698_vm4, %v1595_v19 }
 0x221   :  { %v1253_v41 = vcombine.high %v955_v62, %v955_v62  ;;  %v4644_v1 = vrot.slane %v955_v62, %v4323_v0 }
 0x222   :  { %v1604_v22 = vrot.slane %v1596_v26, %v4323_v0  ;;  %v1611_v58 = vrot.slane %v1597_v60, %v4323_v0  ;;  %v777_v53 = vpop.permute.xlu1 %776 }
 0x223   :  { %5159 = vst [vmem:[#allocation5_spill] sm:$0xff] %v4644_v1  ;;  %v773_v54 = vpop.permute.xlu0 %772  ;;  %v4647_v15 = vrot.slane %v1253_v41, %v4323_v0  ;;  %v4653_v26 = vcombine.high %v4644_v1, %v4644_v1  ;;  %v931_v60 = vsel %vm909_vm3, %v4288_v17, %v777_v53 }
 0x224   :  { %v929_v35 = vsel %vm909_vm3, %v4277_v4, %v773_v54  ;;  %v1612_v19 = vcombine.low %v1604_v22, %v1611_v58  ;;  %v1613_v4 = vcombine.low %v4641_v13, %v4637_v21 }
 0x225   :  { %5160 = vst [vmem:[#allocation6_spill] sm:$0xff] %v4647_v15  ;;  %5161 = vst [vmem:[#allocation7_spill] sm:$0xff] %v4653_v26  ;;  %v954_v5 = vsel %vm40_vm0, %v929_v35, %v873_v42  ;;  %v1631_v22 = vcombine.low %v4653_v26, %v4647_v15 }
 0x226   :  { %v1237_v25 = vcombine.high %v954_v5, %v954_v5  ;;  %v4659_v62 = vrot.slane %v954_v5, %v4323_v0  ;;  %3664 = vmatprep.mubr.msk.f32.mxu1 %vm1698_vm4, %v1612_v19  ;;  %v877_v41 = vpop.permute.xlu1 %876  ;;  %v1621_v15 = vrot.slane %v1613_v4, %v4323_v0 }
 0x227   :  { %v956_v58 = vsel %vm40_vm0, %v931_v60, %v877_v41  ;;  %v779_v54 = vpop.permute.xlu0 %778  ;;  %v1645_v60 = vrot.slane %v1631_v22, %v4323_v0 }
 0x228   :  { %5162 = vst [vmem:[#allocation8_spill] sm:$0xff] %v4659_v62  ;;  %v4668_v42 = vrot.slane %v1237_v25, %v4323_v0  ;;  %v4672_v17 = vcombine.high %v4659_v62, %v4659_v62  ;;  %v4675_v53 = vrot.slane %v956_v58, %v4323_v0  ;;  %v1269_v5 = vcombine.high %v956_v58, %v956_v58 }
 0x229   :  { %v932_v25 = vsel %vm909_vm3, %v4295_v31, %v779_v54 }
 0x22a   :  { %5163 = vst [vmem:[#allocation9_spill] sm:$0xff] %v4668_v42  ;;  %5164 = vst [vmem:[#allocation10_spill] sm:$0xff] %v4672_v17  ;;  %v1614_v35 = vcombine.low %v4659_v62, %v4672_v17  ;;  %v1630_v19 = vcombine.low %v4668_v42, %v4644_v1  ;;  %v783_v61 = vpop.permute.xlu1 %782  ;;  %v4687_v26 = vcombine.high %v4675_v53, %v4675_v53 }
 0x22b   :  { %v879_v41 = vpop.permute.xlu0 %878  ;;  %v4693_v62 = vrot.slane %v1269_v5, %v4323_v0 }
 0x22c   :  { %v957_v63 = vsel %vm40_vm0, %v932_v25, %v879_v41  ;;  %v1628_v17 = vrot.slane %v1614_v35, %v4323_v0  ;;  %v1638_v42 = vrot.slane %v1630_v19, %v4323_v0  ;;  %v1647_v35 = vcombine.low %v4675_v53, %v4687_v26 }
 0x22d   :  { %v1285_v58 = vcombine.high %v957_v63, %v957_v63  ;;  %v4696_v22 = vrot.slane %v957_v63, %v4323_v0 }
 0x22e   :  { %v781_v31 = vpop.permute.xlu1 %780  ;;  %v1629_v54 = vcombine.low %v1621_v15, %v1628_v17  ;;  %v1646_v4 = vcombine.low %v1638_v42, %v1645_v60 }
 0x22f   :  { %5165 = vst [vmem:[#allocation11_spill] sm:$0xff] %v4696_v22  ;;  %v4699_v1 = vrot.slane %v1285_v58, %v4323_v0  ;;  %v933_v25 = vsel %vm909_vm3, %v4310_v36, %v781_v31  ;;  %v881_v41 = vpop.permute.xlu0 %880  ;;  %v4707_v19 = vcombine.high %v4696_v22, %v4696_v22  ;;  %v1648_v63 = vcombine.low %v4693_v62, %v4696_v22 }
 0x230   :  { %v958_v15 = vsel %vm40_vm0, %v933_v25, %v881_v41  ;;  %3665 = vmatmul.mubr.msk.f32.gmra.mrb[12].mxu1 %vm1698_vm4, %v1629_v54  ;;  %v934_v36 = vsel %vm909_vm3, %v4302_v10, %v783_v61 }
 0x231   :  { %5166 = vst [vmem:[#allocation12_spill] sm:$0xff] %v4699_v1  ;;  %5167 = vst [vmem:[#allocation13_spill] sm:$0xff] %v4707_v19  ;;  %v1301_v42 = vcombine.high %v958_v15, %v958_v15  ;;  %v4714_v17 = vrot.slane %v958_v15, %v4323_v0  ;;  %3667 = vmatprep.mubr.msk.f32.mxu1 %vm1698_vm4, %v1646_v4  ;;  %v1662_v5 = vrot.slane %v1648_v63, %v4323_v0 }
 0x232   :  { %v883_v60 = vpop.permute.xlu1 %882  ;;  %v1664_v58 = vcombine.low %v4707_v19, %v4699_v1  ;;  %v1655_v4 = vrot.slane %v1647_v35, %v4323_v0 }
 0x233   :  { %5168 = vst [vmem:[#allocation14_spill] sm:$0xff] %v4714_v17  ;;  %v4723_v31 = vrot.slane %v1301_v42, %v4323_v0  ;;  %v4727_v54 = vcombine.high %v4714_v17, %v4714_v17  ;;  %v959_v25 = vsel %vm40_vm0, %v934_v36, %v883_v60  ;;  %v735_v41 = vpop.permute.xlu0 %734 }
 0x234   :  { %v1372_v15 = vcombine.high %v959_v25, %v959_v25  ;;  %v4732_v10 = vrot.slane %v959_v25, %v4323_v0  ;;  %v910_v63 = vsel %vm909_vm3, 0.0, %v735_v41  ;;  %v1663_v35 = vcombine.low %v1655_v4, %v1662_v5 }
 0x235   :  { %5169 = vst [vmem:[#allocation15_spill] sm:$0xff] %v4727_v54  ;;  %v1665_v61 = vcombine.low %v4714_v17, %v4727_v54  ;;  %v1672_v25 = vrot.slane %v1664_v58, %v4323_v0 }
 0x236   :  { %5170 = vst [vmem:[#allocation16_spill] sm:$0xff] %v4732_v10  ;;  %v4738_v42 = vrot.slane %v1372_v15, %v4323_v0  ;;  %v4742_v22 = vcombine.high %v4732_v10, %v4732_v10  ;;  %v1681_v36 = vcombine.low %v4723_v31, %v4732_v10  ;;  %v835_v60 = vpop.permute.xlu1 %834  ;;  %3668 = vmatmul.mubr.msk.f32.gmra.mrb[14].mxu1 %vm1698_vm4, %v1663_v35 }
 0x237   :  { %v1679_v19 = vrot.slane %v1665_v61, %v4323_v0  ;;  %v935_v54 = vsel %vm40_vm0, %v910_v63, %v835_v60  ;;  %v2018_v35 = vcombine.low %v4491_v50, %v4512_v45 }
 0x238   :  { %v1682_v41 = vcombine.low %v4742_v22, %v4738_v42  ;;  %v981_v15 = vcombine.high %v935_v54, %v935_v54  ;;  %v4753_v1 = vrot.slane %v935_v54, %v4323_v0  ;;  %v1689_v10 = vrot.slane %v1681_v36, %v4323_v0 }
 0x239   :  { %v1680_v17 = vcombine.low %v1672_v25, %v1679_v19  ;;  %v5171_v54 = vcombine.low %v4387_v32, %v4401_v11 }
 0x23a   :  { %v1696_v5 = vrot.slane %v1682_v41, %v4323_v0  ;;  %v4758_v58 = vrot.slane %v981_v15, %v4323_v0  ;;  %v996_v4 = vcombine.high %v4753_v1, %v4753_v1  ;;  %v2371_v61 = vcombine.low %v4418_v3, %v4753_v1 }
 0x23b   :  { %3670 = vmatprep.mubr.msk.f32.mxu1 %vm1698_vm4, %v1680_v17  ;;  %v2378_v19 = vrot.slane %v5171_v54, %v4323_v0  ;;  %v2398_v15 = vcombine.low %v4480_v20, %v4498_v28  ;;  %v5173_v28 = vcombine.low %v4374_v34, %v4377_v55  ;;  %v2078_v34 = vcombine.low %v4561_v2, %v4580_v46 }
 0x23c   :  { %v1697_v63 = vcombine.low %v1689_v10, %v1696_v5  ;;  %v1891_v36 = vcombine.low %v4758_v58, %v4333_v49  ;;  %v2387_v60 = vcombine.low %v996_v4, %v4758_v58  ;;  %v2385_v25 = vrot.slane %v2371_v61, %v4323_v0 }
 0x23d   :  { %v1890_v17 = vcombine.low %v4753_v1, %v996_v4  ;;  %v2019_v49 = vcombine.low %v4524_v38, %v4520_v29  ;;  %v2026_v10 = vrot.slane %v2018_v35, %v4323_v0  ;;  %v1967_v5 = vcombine.low %v4758_v58, %v4436_v39 }
 0x23e   :  { %3671 = vmatmul.mubr.msk.f32.gmra.mrb[16].mxu1 %vm1698_vm4, %v1697_v63  ;;  %v1905_v3 = vrot.slane %v1891_v36, %v4323_v0  ;;  %v2386_v41 = vcombine.low %v2378_v19, %v2385_v25  ;;  %v4782_v11 = vrot.slane %v2387_v60, %v4323_v0  ;;  %v2407_v29 = vcombine.low %v4494_v33, %v4753_v1  ;;  %v5177_v19 = vld [vmem:[#allocation4_spill] sm:$0xff]  ;;  %v5179_v60 = vld [vmem:[#allocation7_spill] sm:$0xff]  ;;  %v5180_v25 = vld [vmem:[#allocation5_spill] sm:$0xff] }
 0x23f   :  { %v4779_v32 = vrot.slane %v1890_v17, %v4323_v0  ;;  %v2061_v38 = vcombine.low %v4567_v47, %v4584_v18  ;;  %v5172_v4 = vcombine.low %v4340_v16, %v4345_v43  ;;  %v2033_v20 = vrot.slane %v2019_v49, %v4323_v0  ;;  %v5183_v49 = vld [vmem:[#allocation12_spill] sm:$0xff] }
 0x240   :  { %3716 = vmatmul.mubr.msk.f32.gmra.mrb[26].mxu0 %vm1698_vm4, %v2386_v41  ;;  %v2395_v45 = vcombine.low %v4782_v11, %v4474_v57  ;;  %v2062_v39 = vcombine.low %v4594_v23, %v4590_v44  ;;  %v2397_v33 = vcombine.low %v4488_v6, %v2026_v10  ;;  %v2405_v47 = vrot.slane %v2398_v15, %v4323_v0  ;;  %v5181_v41 = vld [vmem:[#allocation6_spill] sm:$0xff] }
 0x241   :  { %v1906_v50 = vcombine.low %v4779_v32, %v1905_v3  ;;  %v2045_v16 = vcombine.low %v4550_v14, %v4571_v30  ;;  %v5174_v43 = vcombine.low %v4477_v37, %v4485_v27  ;;  %v1975_v18 = vrot.slane %v1967_v5, %v4323_v0  ;;  %v5185_v5 = vld [vmem:[#allocation3_spill] sm:$0xff] }
 0x242   :  { %3718 = vmatprep.mubr.msk.f32.mxu0 %vm1698_vm4, %v2395_v45  ;;  %v1966_v55 = vcombine.low %v4396_v7, %v4779_v32  ;;  %v2414_v14 = vrot.slane %v2407_v29, %v4323_v0  ;;  %v2095_v30 = vcombine.low %v4623_v12, %v4619_v9  ;;  %v5175_v44 = vcombine.low %v4366_v8, %v4393_v40  ;;  %v5186_v29 = vld [vmem:[#allocation2_spill] sm:$0xff] }
 0x243   :  { %3679 = vmatprep.mubr.msk.f32.mxu1 %vm1698_vm4, %v1906_v50  ;;  %v2406_v23 = vcombine.low %v2033_v20, %v2405_v47  ;;  %v5176_v2 = vcombine.low %v4446_v51, %v4442_v48  ;;  %v2069_v61 = vrot.slane %v2061_v38, %v4323_v0  ;;  %v2076_v54 = vrot.slane %v2062_v39, %v4323_v0  ;;  %v5188_v39 = vld [vmem:[#allocation13_spill] sm:$0xff] }
 0x244   :  { %3680 = vmatmul.mubr.msk.f32.vlgmr.msra.gmra.mrb[0].mxu1 %vm1698_vm4, %v5172_v4  ;;  %3719 = vmatmul.mubr.msk.f32.gmra.mrb[28].mxu0 %vm1698_vm4, %v5174_v43  ;;  %v2415_v7 = vcombine.low %v2414_v14, %v4782_v11  ;;  %v2420_v9 = vcombine.low %v4637_v21, %v4753_v1  ;;  %v2059_v8 = vrot.slane %v2045_v16, %v4323_v0  ;;  %v5190_v16 = vld [vmem:[#allocation8_spill] sm:$0xff] }
 0x245   :  { %3757 = vmatpush3.bf16.msra.mxu1 %v4121_v56  ;;  %3682 = vmatprep.mubr.msk.f32.mxu1 %vm1698_vm4, %v5173_v28  ;;  %v3801_v56 = vld [vmem:[%s5139_s2 + $0x40] sm:$0xff]  ;;  %v1982_v46 = vrot.slane %v5176_v2, %v4323_v0  ;;  %v2079_v40 = vcombine.low %v4576_v52, %v4610_v24  ;;  %v2035_v51 = vcombine.low %v4758_v58, %v4527_v59  ;;  %v5189_v28 = vld [vmem:[#allocation11_spill] sm:$0xff] }
 0x246   :  { %3756 = vmatprep.subr.mxu1 %v3801_v56  ;;  %3721 = vmatprep.mubr.msk.f32.mxu0 %vm1698_vm4, %v2397_v33  ;;  %v2086_v12 = vrot.slane %v2078_v34, %v4323_v0  ;;  %v2419_v63 = vcombine.low %v5177_v19, %v4641_v13  ;;  %v2102_v21 = vrot.slane %v2095_v30, %v4323_v0  ;;  %v5191_v34 = vld [vmem:[#allocation9_spill] sm:$0xff] }
 0x247   :  { %v1983_v48 = vcombine.low %v1975_v18, %v1982_v46  ;;  %v2416_v36 = vcombine.low %v2059_v8, %v2069_v61  ;;  %v2138_v24 = vcombine.low %v4687_v26, %v4693_v62  ;;  %v5178_v52 = vcombine.low %v4474_v57, %v4477_v37  ;;  %v5182_v62 = vld [vmem:[#allocation14_spill] sm:$0xff] }
 0x248   :  { %3683 = vmatmul.mubr.msk.f32.gmra.mrb[2].mxu1 %vm1698_vm4, %v5175_v44  ;;  %3722 = vmatmul.mubr.msk.f32.gmra.mrb[30].mxu0 %vm1698_vm4, %v2406_v23  ;;  %v2417_v59 = vcombine.low %v2076_v54, %v2086_v12  ;;  %v2434_v35 = vrot.slane %v2420_v9, %v4323_v0  ;;  %v2093_v13 = vrot.slane %v2079_v40, %v4323_v0  ;;  %v5193_v9 = vld [vmem:[#allocation15_spill] sm:$0xff] }
 0x249   :  { %3685 = vmatprep.mubr.msk.f32.mxu1 %vm1698_vm4, %v1966_v55  ;;  %3758 = vmatpush3.msra.mxu1 %v3801_v56  ;;  %v2121_v17 = vcombine.low %v5180_v25, %v5179_v60  ;;  %v2042_v3 = vrot.slane %v2035_v51, %v4323_v0  ;;  %v2122_v26 = vcombine.low %v5181_v41, %v4675_v53  ;;  %v5192_v55 = vld [vmem:[#allocation10_spill] sm:$0xff] }
 0x24a   :  { %3724 = vmatprep.mubr.msk.f32.mxu0 %vm1698_vm4, %v2415_v7  ;;  %v2034_v57 = vcombine.low %v2026_v10, %v2033_v20  ;;  %v2427_v37 = vrot.slane %v2419_v63, %v4323_v0  ;;  %v2155_v50 = vcombine.low %v5183_v49, %v5182_v62  ;;  %v5184_v45 = vcombine.low %v4485_v27, %v4488_v6 }
 0x24b   :  { %v2418_v15 = vcombine.low %v2093_v13, %v2102_v21  ;;  %v5187_v38 = vcombine.low %v5185_v5, %v5186_v29  ;;  %v2146_v53 = vrot.slane %v2138_v24, %v4323_v0  ;;  %v2129_v20 = vrot.slane %v2121_v17, %v4323_v0 }
 0x24c   :  { %3686 = vmatmul.mubr.msk.f32.gmra.mrb[4].mxu1 %vm1698_vm4, %v1983_v48  ;;  %3725 = vmatmul.mubr.msk.f32.gmra.mrb[32].mxu0 %vm1698_vm4, %v2416_v36  ;;  %v2435_v10 = vcombine.low %v2427_v37, %v2434_v35  ;;  %v2139_v33 = vcombine.low %v5189_v28, %v5188_v39  ;;  %v2043_v27 = vcombine.low %v4779_v32, %v2042_v3 }
 0x24d   :  { %3688 = vmatprep.mubr.msk.f32.mxu1 %vm1698_vm4, %v5178_v52  ;;  %3727 = vmatprep.mubr.msk.f32.mxu0 %vm1698_vm4, %v2417_v59  ;;  %v2052_v4 = vrot.slane %v5187_v38, %v4323_v0  ;;  %v2136_v6 = vrot.slane %v2122_v26, %v4323_v0  ;;  %v2104_v43 = vcombine.low %v4758_v58, %v5190_v16 }
 0x24e   :  { %v2163_v18 = vrot.slane %v2155_v50, %v4323_v0  ;;  %v2436_v56 = vcombine.low %v4782_v11, %v2129_v20  ;;  %v2105_v14 = vcombine.low %v5192_v55, %v5191_v34  ;;  %v2153_v44 = vrot.slane %v2139_v33, %v4323_v0 }
 0x24f   :  { %v2060_v47 = vcombine.low %v2052_v4, %v2059_v8  ;;  %v2437_v30 = vcombine.low %v2136_v6, %v2146_v53  ;;  %v2077_v23 = vcombine.low %v2069_v61, %v2076_v54  ;;  %v2094_v58 = vcombine.low %v2086_v12, %v2093_v13  ;;  %v5194_v61 = vld [vmem:[#allocation16_spill] sm:$0xff] }
 0x250   :  { %3689 = vmatmul.mubr.msk.f32.gmra.mrb[6].mxu1 %vm1698_vm4, %v5184_v45  ;;  %3728 = vmatmul.mubr.msk.f32.gmra.mrb[34].mxu0 %vm1698_vm4, %v2418_v15  ;;  %v2112_v2 = vrot.slane %v2104_v43, %v4323_v0  ;;  %v2438_v46 = vcombine.low %v2153_v44, %v2163_v18  ;;  %v2119_v7 = vrot.slane %v2105_v14, %v4323_v0 }
 0x251   :  { %3691 = vmatprep.mubr.msk.f32.mxu1 %vm1698_vm4, %v2034_v57  ;;  %3730 = vmatprep.mubr.msk.f32.mxu0 %vm1698_vm4, %v2435_v10  ;;  %v2156_v8 = vcombine.low %v5193_v9, %v4723_v31  ;;  %v2103_v40 = vcombine.low %v2102_v21, %v4779_v32  ;;  %v2439_v54 = vcombine.low %v5194_v61, %v4742_v22 }
 0x252   :  { %v2120_v48 = vcombine.low %v2112_v2, %v2119_v7  ;;  %v2137_v12 = vcombine.low %v2129_v20, %v2136_v6  ;;  %v2154_v63 = vcombine.low %v2146_v53, %v2153_v44  ;;  %v2448_v22 = vcombine.low %v4738_v42, %v4753_v1 }
 0x253   :  { %v2170_v51 = vrot.slane %v2156_v8, %v4323_v0  ;;  %v2446_v19 = vrot.slane %v2439_v54, %v4323_v0 }
 0x254   :  { %3692 = vmatmul.mubr.msk.f32.gmra.mrb[8].mxu1 %vm1698_vm4, %v2043_v27  ;;  %3731 = vmatmul.mubr.msk.f32.gmra.mrb[36].mxu0 %vm1698_vm4, %v2436_v56  ;;  %v2455_v21 = vrot.slane %v2448_v22, %v4323_v0 }
 0x255   :  { %3694 = vmatprep.mubr.msk.f32.mxu1 %vm1698_vm4, %v2060_v47  ;;  %3733 = vmatprep.mubr.msk.f32.mxu0 %vm1698_vm4, %v2437_v30  ;;  %v2171_v31 = vcombine.low %v2163_v18, %v2170_v51  ;;  %v2447_v32 = vcombine.low %v2170_v51, %v2446_v19 }
 0x256   :  { %v2456_v36 = vcombine.low %v2455_v21, %v4782_v11 }
 0x258   :  { %3695 = vmatmul.mubr.msk.f32.gmra.mrb[10].mxu1 %vm1698_vm4, %v2077_v23  ;;  %3734 = vmatmul.mubr.msk.f32.gmra.mrb[38].mxu0 %vm1698_vm4, %v2438_v46 }
 0x259   :  { %3697 = vmatprep.mubr.msk.f32.mxu1 %vm1698_vm4, %v2094_v58 }
 0x25c   :  { %3698 = vmatmul.mubr.msk.f32.gmra.mrb[12].mxu1 %vm1698_vm4, %v2103_v40 }
 0x25d   :  { %3700 = vmatprep.mubr.msk.f32.mxu1 %vm1698_vm4, %v2120_v48 }
 0x260   :  { %3701 = vmatmul.mubr.msk.f32.gmra.mrb[14].mxu1 %vm1698_vm4, %v2137_v12 }
 0x261   :  { %3703 = vmatprep.mubr.msk.f32.mxu1 %vm1698_vm4, %v2154_v63 }
 0x264   :  { %3704 = vmatmul.mubr.msk.f32.gmra.mrb[16].mxu1 %vm1698_vm4, %v2171_v31 }
 0x265   :  { %3736 = vmatprep.mubr.msk.f32.mxu1 %vm1698_vm4, %v2447_v32 }
 0x26c   :  { %3737 = vmatmul.mubr.msk.f32.vlgmr.msra.gmra.mrb[16].mxu1 %vm1698_vm4, %v2456_v36 }
 0x2c4   :  { %v3714_v24 = vpop.f32.mrb[24].mxu0 }
 0x2c5   :  { %v2559_v52 = vpop.f32.mrb[25].mxu0 }
 0x313   :  { %v3717_v59 = vpop.f32.mrb[26].mxu0 }
 0x314   :  { %v2569_v35 = vpop.f32.mrb[27].mxu0 }
 0x317   :  { %v3681_v13 = vpop.f32.mrb[0].mxu1  ;;  %v3720_v3 = vpop.f32.mrb[28].mxu0 }
 0x318   :  { %v3759_v60 = vadd.f32 %v3714_v24, %v3681_v13  ;;  %v2274_v25 = vpop.f32.mrb[1].mxu1  ;;  %v2579_v41 = vpop.f32.mrb[29].mxu0 }
 0x319   :  { %v3760_v17 = vadd.f32 %v2559_v52, %v2274_v25 }
 0x31a   :  { %v2701_v1 = vcombine.high %v3759_v60, %v3759_v60  ;;  %v2708_v42 = vrot.slane %v3759_v60, %v4323_v0 }
 0x31b   :  { %v2684_v26 = vcombine.high %v3760_v17, %v3760_v17  ;;  %v2691_v57 = vrot.slane %v3760_v17, %v4323_v0  ;;  %v3684_v37 = vpop.f32.mrb[2].mxu1  ;;  %v3723_v29 = vpop.f32.mrb[30].mxu0 }
 0x31c   :  { %v2715_v11 = vrot.slane %v2701_v1, %v4323_v0  ;;  %v2716_v62 = vcombine.high %v2708_v42, %v2708_v42  ;;  %v3761_v49 = vadd.f32 %v3717_v59, %v3684_v37  ;;  %v2284_v50 = vpop.f32.mrb[3].mxu1  ;;  %v2589_v20 = vpop.f32.mrb[31].mxu0 }
 0x31d   :  { %v2698_v45 = vrot.slane %v2684_v26, %v4323_v0  ;;  %v2699_v15 = vcombine.high %v2691_v57, %v2691_v57  ;;  %v3762_v5 = vadd.f32 %v2569_v35, %v2284_v50 }
 0x31e   :  { %v2717_v38 = vcombine.high %v2715_v11, %v2715_v11  ;;  %v3020_v4 = vrot.slane %v2716_v62, %v4323_v0  ;;  %v2735_v53 = vcombine.high %v3761_v49, %v3761_v49  ;;  %v2742_v10 = vrot.slane %v3761_v49, %v4323_v0 }
 0x31f   :  { %v2700_v39 = vcombine.high %v2698_v45, %v2698_v45  ;;  %v2990_v28 = vcombine.low %v2691_v57, %v2699_v15  ;;  %v3004_v33 = vrot.slane %v2698_v45, %v4323_v0  ;;  %v2718_v27 = vcombine.high %v3762_v5, %v3762_v5  ;;  %v3687_v6 = vpop.f32.mrb[4].mxu1  ;;  %v4939_v44 = vpop.f32.mrb[32].mxu0 }
 0x320   :  { %v3022_v47 = vcombine.low %v2715_v11, %v2717_v38  ;;  %v2749_v16 = vrot.slane %v2735_v53, %v4323_v0  ;;  %v2750_v43 = vcombine.high %v2742_v10, %v2742_v10  ;;  %v2725_v18 = vrot.slane %v3762_v5, %v4323_v0  ;;  %v2294_v56 = vpop.f32.mrb[5].mxu1  ;;  %v4943_v7 = vpop.f32.mrb[33].mxu0 }
 0x321   :  { %v2997_v34 = vrot.slane %v2990_v28, %v4323_v0  ;;  %v3006_v55 = vcombine.low %v2700_v39, %v2708_v42  ;;  %v2732_v14 = vrot.slane %v2718_v27, %v4323_v0  ;;  %v3763_v30 = vadd.f32 %v3720_v3, %v3687_v6 }
 0x322   :  { %v3054_v23 = vcombine.low %v2742_v10, %v2750_v43  ;;  %v3068_v58 = vrot.slane %v2749_v16, %v4323_v0  ;;  %v2733_v2 = vcombine.high %v2725_v18, %v2725_v18  ;;  %v3029_v46 = vrot.slane %v3022_v47, %v4323_v0 }
 0x323   :  { %v3005_v9 = vcombine.low %v2997_v34, %v3004_v33  ;;  %v3013_v8 = vrot.slane %v3006_v55, %v4323_v0  ;;  %v2734_v40 = vcombine.high %v2732_v14, %v2732_v14  ;;  %v3036_v61 = vrot.slane %v2725_v18, %v4323_v0  ;;  %v3690_v54 = vpop.f32.mrb[6].mxu1  ;;  %v4956_v36 = vpop.f32.mrb[34].mxu0 }
 0x324   :  { %v3061_v48 = vrot.slane %v3054_v23, %v4323_v0  ;;  %v3038_v51 = vcombine.low %v2733_v2, %v2732_v14  ;;  %v2769_v12 = vcombine.high %v3763_v30, %v3763_v30  ;;  %v4949_v19 = vrot.slane %v3763_v30, %v4323_v0  ;;  %v2304_v63 = vpop.f32.mrb[7].mxu1  ;;  %v4962_v13 = vpop.f32.mrb[35].mxu0 }
 0x325   :  { %v3021_v31 = vcombine.low %v3013_v8, %v3020_v4  ;;  %3399 = vst.msk [vmem:[%s5140_s3] sm:$0x3f] %vm3398_vm5, %v3005_v9  ;;  %v3037_v32 = vcombine.low %v3029_v46, %v3036_v61  ;;  %v3052_v22 = vrot.slane %v2734_v40, %v4323_v0  ;;  %v3764_v21 = vadd.f32 %v2579_v41, %v2294_v56 }
 0x326   :  { %v3069_v24 = vcombine.low %v3061_v48, %v3068_v58  ;;  %v3045_v52 = vrot.slane %v3038_v51, %v4323_v0  ;;  %v2783_v59 = vrot.slane %v2769_v12, %v4323_v0  ;;  %v2784_v35 = vcombine.high %v4949_v19, %v4949_v19 }
 0x327   :  { %3400 = vst.msk [vmem:[%s5140_s3 + $0x8] sm:$0x3f] %vm3398_vm5, %v3021_v31  ;;  %3401 = vst.msk [vmem:[%s5140_s3 + $0x10] sm:$0x3f] %vm3398_vm5, %v3037_v32  ;;  %v3100_v60 = vrot.slane %v4949_v19, %v4323_v0  ;;  %v2751_v25 = vcombine.high %v2749_v16, %v2749_v16  ;;  %v2752_v17 = vcombine.high %v3764_v21, %v3764_v21  ;;  %v3693_v1 = vpop.f32.mrb[8].mxu1  ;;  %v4980_v45 = vpop.f32.mrb[36].mxu0 }
 0x328   :  { %v2759_v3 = vrot.slane %v3764_v21, %v4323_v0  ;;  %3403 = vst.msk [vmem:[%s5140_s3 + $0x20] sm:$0x3f] %vm3398_vm5, %v3069_v24  ;;  %v3053_v42 = vcombine.low %v3045_v52, %v3052_v22  ;;  %v2785_v41 = vcombine.high %v2783_v59, %v2783_v59  ;;  %v3102_v26 = vcombine.low %v2784_v35, %v2783_v59  ;;  %v2314_v37 = vpop.f32.mrb[9].mxu1  ;;  %v4989_v4 = vpop.f32.mrb[37].mxu0 }
 0x329   :  { %v3765_v57 = vadd.f32 %v3723_v29, %v3690_v54  ;;  %v2766_v11 = vrot.slane %v2752_v17, %v4323_v0  ;;  %v3766_v50 = vadd.f32 %v2589_v20, %v2304_v63  ;;  %v3767_v34 = vadd.f32 %v4939_v44, %v3693_v1 }
 0x32a   :  { %v2767_v62 = vcombine.high %v2759_v3, %v2759_v3  ;;  %v3070_v49 = vcombine.low %v2751_v25, %v2759_v3  ;;  %3402 = vst.msk [vmem:[%s5140_s3 + $0x18] sm:$0x3f] %vm3398_vm5, %v3053_v42  ;;  %v3109_v15 = vrot.slane %v3102_v26, %v4323_v0  ;;  %v3116_v5 = vrot.slane %v2785_v41, %v4323_v0 }
 0x32b   :  { %v2803_v38 = vcombine.high %v3765_v57, %v3765_v57  ;;  %v2810_v29 = vrot.slane %v3765_v57, %v4323_v0  ;;  %v2768_v53 = vcombine.high %v2766_v11, %v2766_v11  ;;  %v2786_v39 = vcombine.high %v3766_v50, %v3766_v50  ;;  %v3696_v28 = vpop.f32.mrb[10].mxu1  ;;  %v4997_v55 = vpop.f32.mrb[38].mxu0 }
 0x32c   :  { %v3077_v10 = vrot.slane %v3070_v49, %v4323_v0  ;;  %v3084_v20 = vrot.slane %v2767_v62, %v4323_v0  ;;  %v3117_v33 = vcombine.low %v3109_v15, %v3116_v5  ;;  %v2793_v47 = vrot.slane %v3766_v50, %v4323_v0  ;;  %v2324_v16 = vpop.f32.mrb[11].mxu1  ;;  %v5005_v2 = vpop.f32.mrb[39].mxu0 }
 0x32d   :  { %v2817_v27 = vrot.slane %v2803_v38, %v4323_v0  ;;  %v2818_v6 = vcombine.high %v2810_v29, %v2810_v29  ;;  %v3086_v18 = vcombine.low %v2766_v11, %v2768_v53  ;;  %v2800_v56 = vrot.slane %v2786_v39, %v4323_v0 }
 0x32e   :  { %v3085_v43 = vcombine.low %v3077_v10, %v3084_v20  ;;  %3406 = vst.msk [vmem:[%s5140_s3 + $0x38] sm:$0x3f] %vm3398_vm5, %v3117_v33  ;;  %v2801_v23 = vcombine.high %v2793_v47, %v2793_v47  ;;  %v3768_v58 = vadd.f32 %v4943_v7, %v2314_v37  ;;  %v2837_v8 = vcombine.high %v3767_v34, %v3767_v34 }
 0x32f   :  { %v2819_v14 = vcombine.high %v2817_v27, %v2817_v27  ;;  %v3148_v30 = vrot.slane %v2818_v6, %v4323_v0  ;;  %v3093_v46 = vrot.slane %v3086_v18, %v4323_v0  ;;  %v2802_v44 = vcombine.high %v2800_v56, %v2800_v56  ;;  %v3699_v40 = vpop.f32.mrb[12].mxu1 }
 0x330   :  { %3404 = vst.msk [vmem:[%s5140_s3 + $0x28] sm:$0x3f] %vm3398_vm5, %v3085_v43  ;;  %v3132_v9 = vrot.slane %v2800_v56, %v4323_v0  ;;  %v3118_v54 = vcombine.low %v2793_v47, %v2801_v23  ;;  %v2844_v48 = vrot.slane %v3767_v34, %v4323_v0  ;;  %v2820_v51 = vcombine.high %v3768_v58, %v3768_v58  ;;  %v2334_v7 = vpop.f32.mrb[13].mxu1 }
 0x331   :  { %v3150_v61 = vcombine.low %v2817_v27, %v2819_v14  ;;  %v3101_v12 = vcombine.low %v3093_v46, %v3100_v60  ;;  %v3134_v19 = vcombine.low %v2802_v44, %v2810_v29  ;;  %v2851_v63 = vrot.slane %v2837_v8, %v4323_v0 }
 0x332   :  { %v2827_v31 = vrot.slane %v3768_v58, %v4323_v0  ;;  %v3125_v32 = vrot.slane %v3118_v54, %v4323_v0  ;;  %v2852_v22 = vcombine.high %v2844_v48, %v2844_v48  ;;  %v2834_v21 = vrot.slane %v2820_v51, %v4323_v0 }
 0x333   :  { %v3157_v24 = vrot.slane %v3150_v61, %v4323_v0  ;;  %3405 = vst.msk [vmem:[%s5140_s3 + $0x30] sm:$0x3f] %vm3398_vm5, %v3101_v12  ;;  %v3141_v52 = vrot.slane %v3134_v19, %v4323_v0  ;;  %v3196_v59 = vrot.slane %v2851_v63, %v4323_v0  ;;  %v3702_v25 = vpop.f32.mrb[14].mxu1  ;;  %v3769_v42 = vadd.f32 %v4956_v36, %v3696_v28 }
 0x334   :  { %v2835_v35 = vcombine.high %v2827_v31, %v2827_v31  ;;  %v3164_v60 = vrot.slane %v2827_v31, %v4323_v0  ;;  %v3133_v17 = vcombine.low %v3125_v32, %v3132_v9  ;;  %v3182_v3 = vcombine.low %v2844_v48, %v2852_v22  ;;  %v2344_v41 = vpop.f32.mrb[15].mxu1 }
 0x335   :  { %v2836_v1 = vcombine.high %v2834_v21, %v2834_v21  ;;  %v3149_v26 = vcombine.low %v3141_v52, %v3148_v30  ;;  %v3770_v11 = vadd.f32 %v4962_v13, %v2324_v16  ;;  %v2871_v50 = vcombine.high %v3769_v42, %v3769_v42 }
 0x336   :  { %v3165_v57 = vcombine.low %v3157_v24, %v3164_v60  ;;  %v3166_v37 = vcombine.low %v2835_v35, %v2834_v21  ;;  %3407 = vst.msk [vmem:[%s5140_s3 + $0x40] sm:$0x3f] %vm3398_vm5, %v3133_v17  ;;  %v3189_v62 = vrot.slane %v3182_v3, %v4323_v0  ;;  %v2878_v15 = vrot.slane %v3769_v42, %v4323_v0 }
 0x337   :  { %v3180_v49 = vrot.slane %v2836_v1, %v4323_v0  ;;  %3408 = vst.msk [vmem:[%s5140_s3 + $0x48] sm:$0x3f] %vm3398_vm5, %v3149_v26  ;;  %v2853_v13 = vcombine.high %v2851_v63, %v2851_v63  ;;  %v2854_v5 = vcombine.high %v3770_v11, %v3770_v11  ;;  %v2861_v38 = vrot.slane %v3770_v11, %v4323_v0 }
 0x338   :  { %v3173_v36 = vrot.slane %v3166_v37, %v4323_v0  ;;  %3409 = vst.msk [vmem:[%s5140_s3 + $0x50] sm:$0x3f] %vm3398_vm5, %v3165_v57  ;;  %v3197_v29 = vcombine.low %v3189_v62, %v3196_v59  ;;  %v2885_v53 = vrot.slane %v2871_v50, %v4323_v0  ;;  %v2886_v10 = vcombine.high %v2878_v15, %v2878_v15 }
 0x339   :  { %v3228_v20 = vrot.slane %v2878_v15, %v4323_v0  ;;  %v2868_v28 = vrot.slane %v2854_v5, %v4323_v0  ;;  %v2869_v33 = vcombine.high %v2861_v38, %v2861_v38  ;;  %v3198_v27 = vcombine.low %v2853_v13, %v2861_v38 }
 0x33a   :  { %v3181_v39 = vcombine.low %v3173_v36, %v3180_v49  ;;  %3411 = vst.msk [vmem:[%s5140_s3 + $0x60] sm:$0x3f] %vm3398_vm5, %v3197_v29  ;;  %v2887_v6 = vcombine.high %v2885_v53, %v2885_v53  ;;  %v3230_v47 = vcombine.low %v2886_v10, %v2885_v53  ;;  %v3771_v16 = vadd.f32 %v4980_v45, %v3699_v40 }
 0x33b   :  { %v3772_v43 = vadd.f32 %v4989_v4, %v2334_v7  ;;  %v2870_v18 = vcombine.high %v2868_v28, %v2868_v28  ;;  %v3205_v56 = vrot.slane %v3198_v27, %v4323_v0  ;;  %v3212_v34 = vrot.slane %v2869_v33, %v4323_v0 }
 0x33c   :  { %3410 = vst.msk [vmem:[%s5140_s3 + $0x58] sm:$0x3f] %vm3398_vm5, %v3181_v39  ;;  %v3773_v14 = vadd.f32 %v4997_v55, %v3702_v25  ;;  %v3237_v30 = vrot.slane %v3230_v47, %v4323_v0  ;;  %v3244_v23 = vrot.slane %v2887_v6, %v4323_v0  ;;  %v2905_v58 = vcombine.high %v3771_v16, %v3771_v16 }
 0x33d   :  { %v2912_v45 = vrot.slane %v3771_v16, %v4323_v0  ;;  %v3213_v4 = vcombine.low %v3205_v56, %v3212_v34  ;;  %v3214_v46 = vcombine.low %v2868_v28, %v2870_v18  ;;  %v2888_v44 = vcombine.high %v3772_v43, %v3772_v43 }
 0x33e   :  { %v2895_v9 = vrot.slane %v3772_v43, %v4323_v0  ;;  %v3245_v8 = vcombine.low %v3237_v30, %v3244_v23  ;;  %v2919_v40 = vrot.slane %v2905_v58, %v4323_v0  ;;  %v2939_v54 = vcombine.high %v3773_v14, %v3773_v14 }
 0x33f   :  { %v2920_v61 = vcombine.high %v2912_v45, %v2912_v45  ;;  %v3221_v48 = vrot.slane %v3214_v46, %v4323_v0  ;;  %3412 = vst.msk [vmem:[%s5140_s3 + $0x68] sm:$0x3f] %vm3398_vm5, %v3213_v4  ;;  %v2902_v55 = vrot.slane %v2888_v44, %v4323_v0  ;;  %v2946_v7 = vrot.slane %v3773_v14, %v4323_v0  ;;  %v3738_v12 = vpop.f32.mrb[16].mxu1 }
 0x340   :  { %v2903_v51 = vcombine.high %v2895_v9, %v2895_v9  ;;  %3414 = vst.msk [vmem:[%s5140_s3 + $0x78] sm:$0x3f] %vm3398_vm5, %v3245_v8  ;;  %v2921_v19 = vcombine.high %v2919_v40, %v2919_v40  ;;  %v2953_v31 = vrot.slane %v2939_v54, %v4323_v0  ;;  %v3774_v32 = vadd.f32 %v5005_v2, %v2344_v41  ;;  %v2639_v22 = vpop.f32.mrb[17].mxu1 }
 0x341   :  { %v3276_v63 = vrot.slane %v2920_v61, %v4323_v0  ;;  %v3229_v21 = vcombine.low %v3221_v48, %v3228_v20  ;;  %v2904_v24 = vcombine.high %v2902_v55, %v2902_v55  ;;  %v3260_v59 = vrot.slane %v2902_v55, %v4323_v0 }
 0x342   :  { %v3246_v52 = vcombine.low %v2895_v9, %v2903_v51  ;;  %v3278_v35 = vcombine.low %v2919_v40, %v2921_v19  ;;  %v2954_v60 = vcombine.high %v2946_v7, %v2946_v7  ;;  %v3324_v25 = vrot.slane %v2953_v31, %v4323_v0 }
 0x343   :  { %v2922_v17 = vcombine.high %v3774_v32, %v3774_v32  ;;  %3413 = vst.msk [vmem:[%s5140_s3 + $0x70] sm:$0x3f] %vm3398_vm5, %v3229_v21  ;;  %v3262_v1 = vcombine.low %v2904_v24, %v2912_v45  ;;  %v2929_v2 = vrot.slane %v3774_v32, %v4323_v0  ;;  %v2973_v42 = vcombine.high %v3738_v12, %v3738_v12 }
 0x344   :  { %v3253_v3 = vrot.slane %v3246_v52, %v4323_v0  ;;  %v3310_v41 = vcombine.low %v2946_v7, %v2954_v60  ;;  %v3285_v57 = vrot.slane %v3278_v35, %v4323_v0  ;;  %v2980_v37 = vrot.slane %v3738_v12, %v4323_v0 }
 0x345   :  { %v2936_v26 = vrot.slane %v2922_v17, %v4323_v0  ;;  %v3269_v62 = vrot.slane %v3262_v1, %v4323_v0  ;;  %v2937_v49 = vcombine.high %v2929_v2, %v2929_v2  ;;  %v3292_v50 = vrot.slane %v2929_v2, %v4323_v0 }
 0x346   :  { %v3261_v11 = vcombine.low %v3253_v3, %v3260_v59  ;;  %v3317_v15 = vrot.slane %v3310_v41, %v4323_v0  ;;  %v2987_v13 = vrot.slane %v2973_v42, %v4323_v0  ;;  %v2988_v5 = vcombine.high %v2980_v37, %v2980_v37 }
 0x347   :  { %v2938_v36 = vcombine.high %v2936_v26, %v2936_v26  ;;  %v3277_v38 = vcombine.low %v3269_v62, %v3276_v63  ;;  %v3293_v29 = vcombine.low %v3285_v57, %v3292_v50  ;;  %v3294_v53 = vcombine.low %v2937_v49, %v2936_v26 }
 0x348   :  { %3415 = vst.msk [vmem:[%s5140_s3 + $0x80] sm:$0x3f] %vm3398_vm5, %v3261_v11  ;;  %v3325_v10 = vcombine.low %v3317_v15, %v3324_v25  ;;  %v2989_v39 = vcombine.high %v2987_v13, %v2987_v13  ;;  %v3358_v28 = vcombine.low %v2988_v5, %v2987_v13  ;;  %v2955_v27 = vcombine.high %v2953_v31, %v2953_v31 }
 0x349   :  { %v3308_v20 = vrot.slane %v2938_v36, %v4323_v0  ;;  %3416 = vst.msk [vmem:[%s5140_s3 + $0x88] sm:$0x3f] %vm3398_vm5, %v3277_v38  ;;  %v3301_v33 = vrot.slane %v3294_v53, %v4323_v0  ;;  %3417 = vst.msk [vmem:[%s5140_s3 + $0x90] sm:$0x3f] %vm3398_vm5, %v3293_v29  ;;  %v2956_v6 = vcombine.high %v2639_v22, %v2639_v22 }
 0x34a   :  { %v2963_v47 = vrot.slane %v2639_v22, %v4323_v0  ;;  %3419 = vst.msk [vmem:[%s5140_s3 + $0xa0] sm:$0x3f] %vm3398_vm5, %v3325_v10  ;;  %v3365_v16 = vrot.slane %v3358_v28, %v4323_v0  ;;  %v3372_v43 = vrot.slane %v2989_v39, %v4323_v0  ;;  %v3356_v44 = vrot.slane %v2980_v37, %v4323_v0 }
 0x34b   :  { %v3309_v18 = vcombine.low %v3301_v33, %v3308_v20  ;;  %v2970_v56 = vrot.slane %v2956_v6, %v4323_v0 }
 0x34c   :  { %v2971_v34 = vcombine.high %v2963_v47, %v2963_v47  ;;  %v3326_v14 = vcombine.low %v2955_v27, %v2963_v47  ;;  %v3373_v30 = vcombine.low %v3365_v16, %v3372_v43 }
 0x34d   :  { %3418 = vst.msk [vmem:[%s5140_s3 + $0x98] sm:$0x3f] %vm3398_vm5, %v3309_v18  ;;  %v2972_v23 = vcombine.high %v2970_v56, %v2970_v56 }
 0x34e   :  { %v3333_v58 = vrot.slane %v3326_v14, %v4323_v0  ;;  %v3340_v45 = vrot.slane %v2971_v34, %v4323_v0  ;;  %3422 = vst.msk [vmem:[%s5140_s3 + $0xb8] sm:$0x3f] %vm3398_vm5, %v3373_v30 }
 0x34f   :  { %v3342_v46 = vcombine.low %v2970_v56, %v2972_v23 }
 0x350   :  { %v3341_v4 = vcombine.low %v3333_v58, %v3340_v45 }
 0x351   :  { %v3349_v9 = vrot.slane %v3342_v46, %v4323_v0 }
 0x352   :  { %3420 = vst.msk [vmem:[%s5140_s3 + $0xa8] sm:$0x3f] %vm3398_vm5, %v3341_v4 }
 0x353   :  { %v3357_v8 = vcombine.low %v3349_v9, %v3356_v44 }
 0x355   :  { %3421 = vst.msk [vmem:[%s5140_s3 + $0xb0] sm:$0x3f] %vm3398_vm5, %v3357_v8 }

</bundles_post_ra>
